<compile_context>
chip_gen: v7x
topology: tpu7x:2x2x1
jax: 0.10.0
libtpu: 0.0.40
codegen_flags: <defaults>
</compile_context>

<pallas_src>
import functools

import jax
import jax.numpy as jnp
from jax.experimental import pallas as pl
from jax.experimental.pallas import tpu as pltpu


def _round_up(x, m):
    return ((x + m - 1) // m) * m


# ---------------------------------------------------------------------------
# Fused matmul + BatchNorm(scale/shift) + activation kernel.
# Grid: (M/tm, N/tn, K/tk); K is the reduction axis; the f32 VMEM accumulator
# is zeroed at k==0 and the BN + activation epilogue writes the lane-dense
# (tm, tn) output block at the last k step.
# ---------------------------------------------------------------------------
def _matmul_bn_act_kernel(x_ref, w_ref, scale_ref, shift_ref, o_ref, acc_ref,
                          *, act, negative_slope):
    k = pl.program_id(2)

    @pl.when(k == 0)
    def _():
        acc_ref[...] = jnp.zeros_like(acc_ref)

    acc_ref[...] += jnp.dot(x_ref[...], w_ref[...],
                            preferred_element_type=jnp.float32)

    @pl.when(k == pl.num_programs(2) - 1)
    def _():
        y = acc_ref[...] * scale_ref[...] + shift_ref[...]
        if act == "relu":
            y = jnp.maximum(y, 0.0)
        elif act == "leaky_relu":
            y = jnp.where(y >= 0.0, y, y * negative_slope)
        o_ref[...] = y.astype(o_ref.dtype)


def fused_matmul_bn_act(patches, wmat, scale, shift, *, act="none",
                        negative_slope=0.2):
    """act((patches @ wmat) * scale + shift), padded to MXU/lane-friendly tiles."""
    M, K = patches.shape
    Kw, N = wmat.shape
    assert Kw == K

    # Zero-pad K and N to multiples of 128 (exact for the matmul; padded output
    # columns are sliced off).  This keeps every block lane-dense (no masked
    # vst) and (8,128)-aligned on all TPU generations.
    Kp = _round_up(K, 128)
    Np = _round_up(N, 128)

    if M >= 512:
        tm = 512
    elif M >= 256:
        tm = 256
    else:
        tm = _round_up(M, 8)
    Mp = _round_up(M, tm)

    tk = next(c for c in (512, 384, 256, 128) if Kp % c == 0)
    tn = next(c for c in (512, 384, 256, 128) if Np % c == 0)
    # Worst-case double-buffered tiles stay well under v5e/v7x scoped-VMEM limits.

    xp = jnp.pad(patches, ((0, Mp - M), (0, Kp - K)))
    wp = jnp.pad(wmat, ((0, Kp - K), (0, Np - N)))
    sp = jnp.pad(scale.reshape(1, N), ((0, 0), (0, Np - N)))
    bp = jnp.pad(shift.reshape(1, N), ((0, 0), (0, Np - N)))

    kernel = functools.partial(_matmul_bn_act_kernel, act=act,
                               negative_slope=negative_slope)

    out = pl.pallas_call(
        kernel,
        out_shape=jax.ShapeDtypeStruct((Mp, Np), patches.dtype),
        grid_spec=pltpu.PrefetchScalarGridSpec(
            num_scalar_prefetch=0,
            grid=(Mp // tm, Np // tn, Kp // tk),
            in_specs=[
                pl.BlockSpec((tm, tk), lambda i, j, k: (i, k)),
                pl.BlockSpec((tk, tn), lambda i, j, k: (k, j)),
                pl.BlockSpec((1, tn), lambda i, j, k: (0, j)),
                pl.BlockSpec((1, tn), lambda i, j, k: (0, j)),
            ],
            out_specs=pl.BlockSpec((tm, tn), lambda i, j, k: (i, j)),
            scratch_shapes=[pltpu.VMEM((tm, tn), jnp.float32)],
        ),
        compiler_params=pltpu.CompilerParams(
            dimension_semantics=("parallel", "parallel", "arbitrary"),
        ),
    )(xp, wp, sp, bp)

    return out[:M, :N]


# ---------------------------------------------------------------------------
# Layout plumbing (im2col, dilation, NCHW<->NHWC) done with jnp in the wrapper.
# ---------------------------------------------------------------------------
def _nchw_to_nhwc(x):
    return jnp.transpose(x, (0, 2, 3, 1))


def _nhwc_to_nchw(x):
    return jnp.transpose(x, (0, 3, 1, 2))


def _im2col(x_nhwc, kh, kw, pad):
    n, h, w, c = x_nhwc.shape
    xp = jnp.pad(x_nhwc, ((0, 0), (pad, pad), (pad, pad), (0, 0)))
    ho = h + 2 * pad - kh + 1
    wo = w + 2 * pad - kw + 1
    taps = [xp[:, ky:ky + ho, kx:kx + wo, :]
            for ky in range(kh) for kx in range(kw)]
    patches = jnp.stack(taps, axis=3)                  # (n, ho, wo, kh*kw, c)
    return patches.reshape(n * ho * wo, kh * kw * c), (n, ho, wo)


def _dilate2x(x_nhwc):
    n, h, w, c = x_nhwc.shape
    z = jnp.zeros((n, 2 * h - 1, 2 * w - 1, c), x_nhwc.dtype)
    return z.at[:, ::2, ::2, :].set(x_nhwc)


def _fold_bn(gamma, beta, mean, var, eps=1e-5):
    scale = gamma / jnp.sqrt(var + eps)
    shift = beta - mean * scale
    return scale, shift


# ---------------------------------------------------------------------------
# UnetDecoderBlock forward (BatchNorm norm_layer -> use_bias=False, num_layer=1).
# ---------------------------------------------------------------------------
def unet_decoder_block_forward(x, skip, params):
    """x: (N, Cin, H, W), skip: (N, Cout, 2H, 2W) -> (N, Cout, 2H, 2W), NCHW."""
    wt = params["up_weight"]                      # torch layout (Cin, Cout, 4, 4)
    wc = params["conv_weight"]                    # torch layout (Cout, 2*Cout, 3, 3)
    cin, cout = wt.shape[0], wt.shape[1]

    # --- up: ConvTranspose2d(k=4, s=2, p=1) == dilated conv with flipped kernel ---
    x_nhwc = _nchw_to_nhwc(x)
    xd = _dilate2x(x_nhwc)                                   # stride-2 zero insertion
    patches, (n, ho, wo) = _im2col(xd, 4, 4, pad=2)          # pad = k - 1 - p
    wmat_up = jnp.flip(wt, axis=(2, 3)).transpose(2, 3, 0, 1).reshape(16 * cin, cout)
    scale1, shift1 = _fold_bn(params["bn1_gamma"], params["bn1_beta"],
                              params["bn1_mean"], params["bn1_var"])
    # ReLU(concat(a, skip)) == concat(ReLU(a), ReLU(skip)) -> fuse ReLU(a) here.
    up = fused_matmul_bn_act(patches, wmat_up, scale1, shift1, act="relu")
    up = up.reshape(n, ho, wo, cout)
    # TODO(synk): nn.Dropout(0.5) is instantiated in training mode in the original
    # forward; inference (identity) semantics are used here.

    # --- concat with skip + ReLU (skip half) ---
    skip_nhwc = jnp.maximum(_nchw_to_nhwc(skip), 0.0)
    h = jnp.concatenate([up, skip_nhwc], axis=-1)            # (N, 2H, 2W, 2*Cout)

    # --- Conv2d(2*Cout -> Cout, 3x3, p=1) + BN + LeakyReLU(0.2) ---
    patches2, _ = _im2col(h, 3, 3, pad=1)
    wmat_c = wc.transpose(2, 3, 1, 0).reshape(9 * 2 * cout, cout)
    scale2, shift2 = _fold_bn(params["bn2_gamma"], params["bn2_beta"],
                              params["bn2_mean"], params["bn2_var"])
    out = fused_matmul_bn_act(patches2, wmat_c, scale2, shift2,
                              act="leaky_relu", negative_slope=0.2)
    return _nhwc_to_nchw(out.reshape(n, ho, wo, cout))


# ---------------------------------------------------------------------------
# Pure-JAX reference (lax convolutions) for an in-script correctness check.
# ---------------------------------------------------------------------------
def _reference_forward(x, skip, params):
    wt = params["up_weight"]
    wc = params["conv_weight"]
    w_conv = jnp.flip(wt, axis=(2, 3)).transpose(1, 0, 2, 3)   # (Cout, Cin, 4, 4)
    up = jax.lax.conv_general_dilated(
        x, w_conv, window_strides=(1, 1), padding=((2, 2), (2, 2)),
        lhs_dilation=(2, 2), dimension_numbers=("NCHW", "OIHW", "NCHW"),
        precision=jax.lax.Precision.HIGHEST)
    s1, b1 = _fold_bn(params["bn1_gamma"], params["bn1_beta"],
                      params["bn1_mean"], params["bn1_var"])
    up = up * s1[None, :, None, None] + b1[None, :, None, None]
    h = jnp.maximum(jnp.concatenate([up, skip], axis=1), 0.0)
    out = jax.lax.conv_general_dilated(
        h, wc, window_strides=(1, 1), padding=((1, 1), (1, 1)),
        dimension_numbers=("NCHW", "OIHW", "NCHW"),
        precision=jax.lax.Precision.HIGHEST)
    s2, b2 = _fold_bn(params["bn2_gamma"], params["bn2_beta"],
                      params["bn2_mean"], params["bn2_var"])
    out = out * s2[None, :, None, None] + b2[None, :, None, None]
    return jnp.where(out >= 0.0, out, out * 0.2)


if __name__ == "__main__":
    key = jax.random.PRNGKey(0)
    input_nc, output_nc = 4, 8
    n, h, w = 2, 16, 16

    ks = jax.random.split(key, 8)
    x = jax.random.normal(ks[0], (n, input_nc, h, w), jnp.float32)
    skip = jax.random.normal(ks[1], (n, output_nc, 2 * h, 2 * w), jnp.float32)

    params = dict(
        up_weight=jax.random.normal(ks[2], (input_nc, output_nc, 4, 4), jnp.float32)
        * (1.0 / (input_nc * 16) ** 0.5),
        conv_weight=jax.random.normal(ks[3], (output_nc, 2 * output_nc, 3, 3), jnp.float32)
        * (1.0 / (2 * output_nc * 9) ** 0.5),
        bn1_gamma=1.0 + 0.1 * jax.random.normal(ks[4], (output_nc,), jnp.float32),
        bn1_beta=0.1 * jax.random.normal(ks[5], (output_nc,), jnp.float32),
        bn1_mean=jnp.zeros((output_nc,), jnp.float32),
        bn1_var=jnp.ones((output_nc,), jnp.float32),
        bn2_gamma=1.0 + 0.1 * jax.random.normal(ks[6], (output_nc,), jnp.float32),
        bn2_beta=0.1 * jax.random.normal(ks[7], (output_nc,), jnp.float32),
        bn2_mean=jnp.zeros((output_nc,), jnp.float32),
        bn2_var=jnp.ones((output_nc,), jnp.float32),
    )

    fwd = jax.jit(unet_decoder_block_forward)
    out = fwd(x, skip, params)
    jax.block_until_ready(out)

    assert out.shape == (n, output_nc, 2 * h, 2 * w)
    assert out.dtype == jnp.float32

    ref = _reference_forward(x, skip, params)
    max_diff = float(jnp.max(jnp.abs(out - ref)))
    assert jnp.allclose(out, ref, atol=5e-2, rtol=5e-2), max_diff

    print("KERNEL_OK")
</pallas_src>

<mosaic_0001>
module attributes {stable_mosaic.version = 11 : i64} {
  func.func @_matmul_bn_act_kernel(%arg0: i32, %arg1: i32, %arg2: i32, %arg3: memref<512x128xf32, #tpu.memory_space<vmem>>, %arg4: memref<128x128xf32, #tpu.memory_space<vmem>>, %arg5: memref<1x128xf32, #tpu.memory_space<vmem>>, %arg6: memref<1x128xf32, #tpu.memory_space<vmem>>, %arg7: memref<512x128xf32, #tpu.memory_space<vmem>>, %arg8: memref<512x128xf32, #tpu.memory_space<vmem>>) attributes {dimension_semantics = [#tpu.dimension_semantics<parallel>, #tpu.dimension_semantics<parallel>, #tpu.dimension_semantics<arbitrary>], iteration_bounds = array<i64: 4, 1, 1>, scalar_prefetch = 0 : i64, scratch_operands = 1 : i64, tpu.core_type = #tpu.core_type<tc>, window_params = [{transform_indices = @transform_0, window_bounds = array<i64: 512, 128>}, {transform_indices = @transform_1, window_bounds = array<i64: 128, 128>}, {transform_indices = @transform_2, window_bounds = array<i64: 1, 128>}, {transform_indices = @transform_3, window_bounds = array<i64: 1, 128>}, {transform_indices = @transform_4, window_bounds = array<i64: 512, 128>}]} {
    %c0_i32 = arith.constant 0 : i32
    %0 = arith.cmpi eq, %arg2, %c0_i32 : i32
    %1 = arith.extui %0 : i1 to i32
    %c0_i32_0 = arith.constant 0 : i32
    %2 = arith.cmpi ne, %1, %c0_i32_0 : i32
    scf.if %2 {
      %cst_10 = arith.constant 0.000000e+00 : f32
      %12 = vector.broadcast %cst_10 : f32 to vector<512x128xf32>
      %c0_11 = arith.constant 0 : index
      %c0_12 = arith.constant 0 : index
      %13 = vector.load %arg8[%c0_11, %c0_12] : memref<512x128xf32, #tpu.memory_space<vmem>>, vector<512x128xf32>
      tpu.vector_store %arg8[%c0_11, %c0_12], %12 {strides = array<i32>} : memref<512x128xf32, #tpu.memory_space<vmem>>, vector<512x128xf32>,
    } else {
    }
    %c0 = arith.constant 0 : index
    %c0_1 = arith.constant 0 : index
    %3 = vector.load %arg8[%c0, %c0_1] : memref<512x128xf32, #tpu.memory_space<vmem>>, vector<512x128xf32>
    %c0_2 = arith.constant 0 : index
    %c0_3 = arith.constant 0 : index
    %4 = vector.load %arg3[%c0_2, %c0_3] : memref<512x128xf32, #tpu.memory_space<vmem>>, vector<512x128xf32>
    %c0_4 = arith.constant 0 : index
    %c0_5 = arith.constant 0 : index
    %5 = vector.load %arg4[%c0_4, %c0_5] : memref<128x128xf32, #tpu.memory_space<vmem>>, vector<128x128xf32>
    %cst = arith.constant dense<0.000000e+00> : vector<512x128xf32>
    %6 = tpu.matmul %4, %5, %cst {dimension_numbers = #tpu.dot_dimension_numbers<[1], [0], [0], [1], [0, 0, 1, 1], [], []>} : vector<512x128xf32>, vector<128x128xf32>, vector<512x128xf32> -> vector<512x128xf32>
    %7 = arith.addf %3, %6 : vector<512x128xf32>
    %c0_6 = arith.constant 0 : index
    %c0_7 = arith.constant 0 : index
    %8 = vector.load %arg8[%c0_6, %c0_7] : memref<512x128xf32, #tpu.memory_space<vmem>>, vector<512x128xf32>
    tpu.vector_store %arg8[%c0_6, %c0_7], %7 {strides = array<i32>} : memref<512x128xf32, #tpu.memory_space<vmem>>, vector<512x128xf32>,
    %c0_i32_8 = arith.constant 0 : i32
    %9 = arith.cmpi eq, %arg2, %c0_i32_8 : i32
    %10 = arith.extui %9 : i1 to i32
    %c0_i32_9 = arith.constant 0 : i32
    %11 = arith.cmpi ne, %10, %c0_i32_9 : i32
    scf.if %11 {
      %c0_10 = arith.constant 0 : index
      %c0_11 = arith.constant 0 : index
      %12 = vector.load %arg8[%c0_10, %c0_11] : memref<512x128xf32, #tpu.memory_space<vmem>>, vector<512x128xf32>
      %c0_12 = arith.constant 0 : index
      %c0_13 = arith.constant 0 : index
      %13 = vector.load %arg5[%c0_12, %c0_13] : memref<1x128xf32, #tpu.memory_space<vmem>>, vector<1x128xf32>
      %14 = vector.broadcast %13 : vector<1x128xf32> to vector<512x128xf32>
      %15 = arith.mulf %12, %14 : vector<512x128xf32>
      %c0_14 = arith.constant 0 : index
      %c0_15 = arith.constant 0 : index
      %16 = vector.load %arg6[%c0_14, %c0_15] : memref<1x128xf32, #tpu.memory_space<vmem>>, vector<1x128xf32>
      %17 = vector.broadcast %16 : vector<1x128xf32> to vector<512x128xf32>
      %18 = arith.addf %15, %17 : vector<512x128xf32>
      %cst_16 = arith.constant 0.000000e+00 : f32
      %19 = vector.broadcast %cst_16 : f32 to vector<512x128xf32>
      %20 = arith.maximumf %18, %19 : vector<512x128xf32>
      %c0_17 = arith.constant 0 : index
      %c0_18 = arith.constant 0 : index
      %21 = vector.load %arg7[%c0_17, %c0_18] : memref<512x128xf32, #tpu.memory_space<vmem>>, vector<512x128xf32>
      tpu.vector_store %arg7[%c0_17, %c0_18], %20 {strides = array<i32>} : memref<512x128xf32, #tpu.memory_space<vmem>>, vector<512x128xf32>,
    } else {
    }
    return
  }
  func.func @transform_0(%arg0: i32, %arg1: i32, %arg2: i32) -> (i32, i32) {
    %c0_i32 = arith.constant 0 : i32
    return %arg0, %arg2 : i32, i32
  }
  func.func @transform_1(%arg0: i32, %arg1: i32, %arg2: i32) -> (i32, i32) {
    %c0_i32 = arith.constant 0 : i32
    return %arg2, %arg1 : i32, i32
  }
  func.func @transform_2(%arg0: i32, %arg1: i32, %arg2: i32) -> (i32, i32) {
    %c0_i32 = arith.constant 0 : i32
    %c0_i32_0 = arith.constant 0 : i32
    return %c0_i32, %arg1 : i32, i32
  }
  func.func @transform_3(%arg0: i32, %arg1: i32, %arg2: i32) -> (i32, i32) {
    %c0_i32 = arith.constant 0 : i32
    %c0_i32_0 = arith.constant 0 : i32
    return %c0_i32, %arg1 : i32, i32
  }
  func.func @transform_4(%arg0: i32, %arg1: i32, %arg2: i32) -> (i32, i32) {
    %c0_i32 = arith.constant 0 : i32
    return %arg0, %arg1 : i32, i32
  }
}

module attributes {stable_mosaic.version = 11 : i64} {
  func.func @_matmul_bn_act_kernel(%arg0: i32, %arg1: i32, %arg2: i32, %arg3: memref<512x256xf32, #tpu.memory_space<vmem>>, %arg4: memref<256x128xf32, #tpu.memory_space<vmem>>, %arg5: memref<1x128xf32, #tpu.memory_space<vmem>>, %arg6: memref<1x128xf32, #tpu.memory_space<vmem>>, %arg7: memref<512x128xf32, #tpu.memory_space<vmem>>, %arg8: memref<512x128xf32, #tpu.memory_space<vmem>>) attributes {dimension_semantics = [#tpu.dimension_semantics<parallel>, #tpu.dimension_semantics<parallel>, #tpu.dimension_semantics<arbitrary>], iteration_bounds = array<i64: 4, 1, 1>, scalar_prefetch = 0 : i64, scratch_operands = 1 : i64, tpu.core_type = #tpu.core_type<tc>, window_params = [{transform_indices = @transform_0, window_bounds = array<i64: 512, 256>}, {transform_indices = @transform_1, window_bounds = array<i64: 256, 128>}, {transform_indices = @transform_2, window_bounds = array<i64: 1, 128>}, {transform_indices = @transform_3, window_bounds = array<i64: 1, 128>}, {transform_indices = @transform_4, window_bounds = array<i64: 512, 128>}]} {
    %c0_i32 = arith.constant 0 : i32
    %0 = arith.cmpi eq, %arg2, %c0_i32 : i32
    %1 = arith.extui %0 : i1 to i32
    %c0_i32_0 = arith.constant 0 : i32
    %2 = arith.cmpi ne, %1, %c0_i32_0 : i32
    scf.if %2 {
      %cst_10 = arith.constant 0.000000e+00 : f32
      %12 = vector.broadcast %cst_10 : f32 to vector<512x128xf32>
      %c0_11 = arith.constant 0 : index
      %c0_12 = arith.constant 0 : index
      %13 = vector.load %arg8[%c0_11, %c0_12] : memref<512x128xf32, #tpu.memory_space<vmem>>, vector<512x128xf32>
      tpu.vector_store %arg8[%c0_11, %c0_12], %12 {strides = array<i32>} : memref<512x128xf32, #tpu.memory_space<vmem>>, vector<512x128xf32>,
    } else {
    }
    %c0 = arith.constant 0 : index
    %c0_1 = arith.constant 0 : index
    %3 = vector.load %arg8[%c0, %c0_1] : memref<512x128xf32, #tpu.memory_space<vmem>>, vector<512x128xf32>
    %c0_2 = arith.constant 0 : index
    %c0_3 = arith.constant 0 : index
    %4 = vector.load %arg3[%c0_2, %c0_3] : memref<512x256xf32, #tpu.memory_space<vmem>>, vector<512x256xf32>
    %c0_4 = arith.constant 0 : index
    %c0_5 = arith.constant 0 : index
    %5 = vector.load %arg4[%c0_4, %c0_5] : memref<256x128xf32, #tpu.memory_space<vmem>>, vector<256x128xf32>
    %cst = arith.constant dense<0.000000e+00> : vector<512x128xf32>
    %6 = tpu.matmul %4, %5, %cst {dimension_numbers = #tpu.dot_dimension_numbers<[1], [0], [0], [1], [0, 0, 1, 1], [], []>} : vector<512x256xf32>, vector<256x128xf32>, vector<512x128xf32> -> vector<512x128xf32>
    %7 = arith.addf %3, %6 : vector<512x128xf32>
    %c0_6 = arith.constant 0 : index
    %c0_7 = arith.constant 0 : index
    %8 = vector.load %arg8[%c0_6, %c0_7] : memref<512x128xf32, #tpu.memory_space<vmem>>, vector<512x128xf32>
    tpu.vector_store %arg8[%c0_6, %c0_7], %7 {strides = array<i32>} : memref<512x128xf32, #tpu.memory_space<vmem>>, vector<512x128xf32>,
    %c0_i32_8 = arith.constant 0 : i32
    %9 = arith.cmpi eq, %arg2, %c0_i32_8 : i32
    %10 = arith.extui %9 : i1 to i32
    %c0_i32_9 = arith.constant 0 : i32
    %11 = arith.cmpi ne, %10, %c0_i32_9 : i32
    scf.if %11 {
      %c0_10 = arith.constant 0 : index
      %c0_11 = arith.constant 0 : index
      %12 = vector.load %arg8[%c0_10, %c0_11] : memref<512x128xf32, #tpu.memory_space<vmem>>, vector<512x128xf32>
      %c0_12 = arith.constant 0 : index
      %c0_13 = arith.constant 0 : index
      %13 = vector.load %arg5[%c0_12, %c0_13] : memref<1x128xf32, #tpu.memory_space<vmem>>, vector<1x128xf32>
      %14 = vector.broadcast %13 : vector<1x128xf32> to vector<512x128xf32>
      %15 = arith.mulf %12, %14 : vector<512x128xf32>
      %c0_14 = arith.constant 0 : index
      %c0_15 = arith.constant 0 : index
      %16 = vector.load %arg6[%c0_14, %c0_15] : memref<1x128xf32, #tpu.memory_space<vmem>>, vector<1x128xf32>
      %17 = vector.broadcast %16 : vector<1x128xf32> to vector<512x128xf32>
      %18 = arith.addf %15, %17 : vector<512x128xf32>
      %cst_16 = arith.constant 0.000000e+00 : f32
      %19 = vector.broadcast %cst_16 : f32 to vector<512x128xf32>
      %20 = arith.cmpf oge, %18, %19 : vector<512x128xf32>
      %cst_17 = arith.constant 2.000000e-01 : f32
      %21 = vector.broadcast %cst_17 : f32 to vector<512x128xf32>
      %22 = arith.mulf %18, %21 : vector<512x128xf32>
      %23 = arith.select %20, %18, %22 : vector<512x128xi1>, vector<512x128xf32>
      %c0_18 = arith.constant 0 : index
      %c0_19 = arith.constant 0 : index
      %24 = vector.load %arg7[%c0_18, %c0_19] : memref<512x128xf32, #tpu.memory_space<vmem>>, vector<512x128xf32>
      tpu.vector_store %arg7[%c0_18, %c0_19], %23 {strides = array<i32>} : memref<512x128xf32, #tpu.memory_space<vmem>>, vector<512x128xf32>,
    } else {
    }
    return
  }
  func.func @transform_0(%arg0: i32, %arg1: i32, %arg2: i32) -> (i32, i32) {
    %c0_i32 = arith.constant 0 : i32
    return %arg0, %arg2 : i32, i32
  }
  func.func @transform_1(%arg0: i32, %arg1: i32, %arg2: i32) -> (i32, i32) {
    %c0_i32 = arith.constant 0 : i32
    return %arg2, %arg1 : i32, i32
  }
  func.func @transform_2(%arg0: i32, %arg1: i32, %arg2: i32) -> (i32, i32) {
    %c0_i32 = arith.constant 0 : i32
    %c0_i32_0 = arith.constant 0 : i32
    return %c0_i32, %arg1 : i32, i32
  }
  func.func @transform_3(%arg0: i32, %arg1: i32, %arg2: i32) -> (i32, i32) {
    %c0_i32 = arith.constant 0 : i32
    %c0_i32_0 = arith.constant 0 : i32
    return %c0_i32, %arg1 : i32, i32
  }
  func.func @transform_4(%arg0: i32, %arg1: i32, %arg2: i32) -> (i32, i32) {
    %c0_i32 = arith.constant 0 : i32
    return %arg0, %arg1 : i32, i32
  }
}

</mosaic_0001>

<bundles_post_ra>
// kernel: unet_decoder_block_forward.2
= control target key start
LH: loop header
LB: loop body
LE: loop exit
PB: predicated region body
PF: predicated region fallthrough
CT: control target
= control target key end

     0   :  { %s1830_s15 = smov 0   ;;  %s1832_s16 = smov 0   ;;  %s2188_s0 = inlined_call_operand.vmem [shape: f32[2048,128], index: 0, kind: input, shape index: {}]   ;;  %s2189_s1 = inlined_call_operand.vmem [shape: f32[128,128], index: 1, kind: input, shape index: {}]   ;;  %s2190_s2 = inlined_call_operand.vmem [shape: f32[1,128], index: 2, kind: input, shape index: {}]   ;;  %s2191_s3 = inlined_call_operand.vmem [shape: f32[1,128], index: 3, kind: input, shape index: {}]   ;;  %s2192_s4 = inlined_call_operand.vmem [shape: f32[2048,128], index: 4, kind: output, shape index: {}]  }
   0x1   :  { %s1834_s17 = smov 0  }
   0x2 LB: > { %s33_s18 = sadd.s32 1, %s1799_s16  ;;  %p1492_p0 = scmp.ge.s32.totalorder %s1803_s17, 1  ;;  %s1803_s17 = sphi %s1834_s17, %s14_s17   ;;  %s1799_s16 = sphi %s1832_s16, %s2194_s16   ;;  %s1795_s15 = sphi %s1830_s15, %s2193_s15  }
   0x3   : > { %p35_p1 = scmp.ge.s32.totalorder %s33_s18, 4  ;;  %p221_p2 = scmp.lt.s32.totalorder %s1803_s17, 5 }
   0x5   : > { %s2196_s18 = smov (%p35_p1, %s33_s18), 0  ;;  %p222_p3 = pnand %p1492_p0, %p221_p2 }
   0x6   : > { %v496_v0 = vld [vmem:[%s2189_s1] sm:$0xff] (!%p222_p3)  ;;  %v497_v1 = vld [vmem:[%s2189_s1 + $0x8] sm:$0xff] (!%p222_p3)  ;;  %v498_v2 = vld [vmem:[%s2189_s1 + $0x10] sm:$0xff] (!%p222_p3)  ;;  %s1493_s25 = sshll.u32 (!%p222_p3), %s1795_s15, 6 }
   0x7   : > { %225 = sbr.rel (%p222_p3) target bundleno = 322 (0x142), region = 36  ;;  %v1709_v3 = vpack.c.bf16 (!%p222_p3), %v497_v1, %v496_v0  ;;  %v499_v4 = vld [vmem:[%s2189_s1 + $0x18] sm:$0xff] (!%p222_p3)  ;;  %p268_p4 = scmp.lt.s32.totalorder (!%p222_p3), %s1493_s25, 255  ;;  %v500_v6 = vld [vmem:[%s2189_s1 + $0x20] sm:$0xff] (!%p222_p3)  ;;  %v501_v7 = vld [vmem:[%s2189_s1 + $0x28] sm:$0xff] (!%p222_p3) }
   0x8   : > { %v1713_v5 = vpack.c.bf16 (!%p222_p3), %v499_v4, %v498_v2  ;;  %v1717_v8 = vpack.c.bf16 (!%p222_p3), %v501_v7, %v500_v6  ;;  %v502_v9 = vld [vmem:[%s2189_s1 + $0x30] sm:$0xff] (!%p222_p3)  ;;  %v503_v10 = vld [vmem:[%s2189_s1 + $0x38] sm:$0xff] (!%p222_p3)  ;;  %v504_v14 = vld [vmem:[%s2189_s1 + $0x40] sm:$0xff] (!%p222_p3) }
   0x9   : > { %1710 = vmatprep.subr.bf16.mxu0 (!%p222_p3), %v1709_v3  ;;  %1741 = vmatprep.subr.bf16.mxu1 (!%p222_p3), %v1709_v3  ;;  %v1721_v13 = vpack.c.bf16 (!%p222_p3), %v503_v10, %v502_v9  ;;  %v505_v15 = vld [vmem:[%s2189_s1 + $0x48] sm:$0xff] (!%p222_p3)  ;;  %v506_v17 = vld [vmem:[%s2189_s1 + $0x50] sm:$0xff] (!%p222_p3)  ;;  %v507_v18 = vld [vmem:[%s2189_s1 + $0x58] sm:$0xff] (!%p222_p3) }
   0xa   : > { %1712 = vmatpush3.bf16.msra.mxu0 (!%p222_p3), %v1709_v3  ;;  %1749 = vmatpush3.bf16.msra.mxu1 (!%p222_p3), %v1709_v3  ;;  %v1725_v16 = vpack.c.bf16 (!%p222_p3), %v505_v15, %v504_v14  ;;  %v1729_v19 = vpack.c.bf16 (!%p222_p3), %v507_v18, %v506_v17  ;;  %v508_v20 = vld [vmem:[%s2189_s1 + $0x60] sm:$0xff] (!%p222_p3)  ;;  %v509_v21 = vld [vmem:[%s2189_s1 + $0x68] sm:$0xff] (!%p222_p3)  ;;  %v510_v23 = vld [vmem:[%s2189_s1 + $0x70] sm:$0xff] (!%p222_p3) }
   0xb   : > { %1714 = vmatprep.subr.bf16.mxu0 (!%p222_p3), %v1713_v5  ;;  %1742 = vmatprep.subr.bf16.mxu1 (!%p222_p3), %v1713_v5  ;;  %v1733_v22 = vpack.c.bf16 (!%p222_p3), %v509_v21, %v508_v20  ;;  %v511_v24 = vld [vmem:[%s2189_s1 + $0x78] sm:$0xff] (!%p222_p3) }
   0xc   : > { %v1737_v25 = vpack.c.bf16 (!%p222_p3), %v511_v24, %v510_v23  ;;  %v1973_v24 = vld [vmem:[%s2190_s2] ss:$0 sm:$0xff] (!%p222_p3) }
   0xe   : > { %s2198_s25 = smov (!%p268_p4, %s1493_s25), 255  ;;  %1716 = vmatpush3.bf16.msra.mxu0 %v1713_v5  ;;  %1750 = vmatpush3.bf16.msra.mxu1 %v1713_v5 }
   0xf   : > { %s1494_s6 = sshll.u32 %s2198_s25, 3  ;;  %1718 = vmatprep.subr.bf16.mxu0 %v1717_v8  ;;  %1743 = vmatprep.subr.bf16.mxu1 %v1717_v8 }
  0x10   : > { %s1880_s13 = scalar_lea.vmem %s2188_s0, %s1494_s6  ;;  %s1991_s15 = scalar_lea.vmem %s2192_s4, %s1494_s6 }
  0x11   : > { %v432_v11 = vld [vmem:[%s1880_s13] sm:$0xff]  ;;  %v433_v26 = vld [vmem:[%s1880_s13 + $0x8] sm:$0xff]  ;;  %v434_v28 = vld [vmem:[%s1880_s13 + $0x10] sm:$0xff] }
  0x12   : > { %v464_v12 = vld [vmem:[%s1880_s13 + $0x100] sm:$0xff]  ;;  %1613 = vmatprep.mubr.f32.mxu0 %v432_v11  ;;  %1720 = vmatpush3.bf16.msra.mxu0 %v1717_v8  ;;  %v465_v27 = vld [vmem:[%s1880_s13 + $0x108] sm:$0xff]  ;;  %v466_v29 = vld [vmem:[%s1880_s13 + $0x110] sm:$0xff] }
  0x13   : > { %1661 = vmatprep.mubr.f32.mxu1 %v464_v12  ;;  %1751 = vmatpush3.bf16.msra.mxu1 %v1717_v8  ;;  %v435_v30 = vld [vmem:[%s1880_s13 + $0x18] sm:$0xff]  ;;  %v436_v32 = vld [vmem:[%s1880_s13 + $0x20] sm:$0xff]  ;;  %v437_v34 = vld [vmem:[%s1880_s13 + $0x28] sm:$0xff] }
  0x14   : > { %1722 = vmatprep.subr.bf16.mxu0 %v1721_v13  ;;  %1744 = vmatprep.subr.bf16.mxu1 %v1721_v13  ;;  %v467_v31 = vld [vmem:[%s1880_s13 + $0x118] sm:$0xff]  ;;  %v468_v33 = vld [vmem:[%s1880_s13 + $0x120] sm:$0xff]  ;;  %v469_v35 = vld [vmem:[%s1880_s13 + $0x128] sm:$0xff] }
  0x15   : > { %v438_v36 = vld [vmem:[%s1880_s13 + $0x30] sm:$0xff]  ;;  %v439_v38 = vld [vmem:[%s1880_s13 + $0x38] sm:$0xff]  ;;  %v440_v40 = vld [vmem:[%s1880_s13 + $0x40] sm:$0xff] }
  0x16   : > { %1724 = vmatpush3.bf16.msra.mxu0 %v1721_v13  ;;  %v470_v37 = vld [vmem:[%s1880_s13 + $0x130] sm:$0xff]  ;;  %v471_v39 = vld [vmem:[%s1880_s13 + $0x138] sm:$0xff]  ;;  %v472_v41 = vld [vmem:[%s1880_s13 + $0x140] sm:$0xff] }
  0x17   : > { %1752 = vmatpush3.bf16.msra.mxu1 %v1721_v13  ;;  %1726 = vmatprep.subr.bf16.mxu0 %v1725_v16  ;;  %v441_v42 = vld [vmem:[%s1880_s13 + $0x48] sm:$0xff]  ;;  %v442_v44 = vld [vmem:[%s1880_s13 + $0x50] sm:$0xff]  ;;  %v443_v46 = vld [vmem:[%s1880_s13 + $0x58] sm:$0xff] }
  0x18   : > { %1745 = vmatprep.subr.bf16.mxu1 %v1725_v16  ;;  %v473_v43 = vld [vmem:[%s1880_s13 + $0x148] sm:$0xff]  ;;  %v474_v45 = vld [vmem:[%s1880_s13 + $0x150] sm:$0xff]  ;;  %v475_v47 = vld [vmem:[%s1880_s13 + $0x158] sm:$0xff] }
  0x19   : > { %v444_v48 = vld [vmem:[%s1880_s13 + $0x60] sm:$0xff]  ;;  %v445_v50 = vld [vmem:[%s1880_s13 + $0x68] sm:$0xff]  ;;  %v446_v52 = vld [vmem:[%s1880_s13 + $0x70] sm:$0xff] }
  0x1a   : > { %1728 = vmatpush3.bf16.msra.mxu0 %v1725_v16  ;;  %v476_v49 = vld [vmem:[%s1880_s13 + $0x160] sm:$0xff]  ;;  %v477_v51 = vld [vmem:[%s1880_s13 + $0x168] sm:$0xff]  ;;  %v478_v53 = vld [vmem:[%s1880_s13 + $0x170] sm:$0xff] }
  0x1b   : > { %1753 = vmatpush3.bf16.msra.mxu1 %v1725_v16  ;;  %1730 = vmatprep.subr.bf16.mxu0 %v1729_v19  ;;  %v447_v54 = vld [vmem:[%s1880_s13 + $0x78] sm:$0xff]  ;;  %v448_v56 = vld [vmem:[%s1880_s13 + $0x80] sm:$0xff]  ;;  %v449_v58 = vld [vmem:[%s1880_s13 + $0x88] sm:$0xff] }
  0x1c   : > { %1746 = vmatprep.subr.bf16.mxu1 %v1729_v19  ;;  %v479_v55 = vld [vmem:[%s1880_s13 + $0x178] sm:$0xff]  ;;  %v480_v57 = vld [vmem:[%s1880_s13 + $0x180] sm:$0xff]  ;;  %v481_v59 = vld [vmem:[%s1880_s13 + $0x188] sm:$0xff] }
  0x1d   : > { %v450_v60 = vld [vmem:[%s1880_s13 + $0x90] sm:$0xff]  ;;  %v451_v62 = vld [vmem:[%s1880_s13 + $0x98] sm:$0xff]  ;;  %v452_v0 = vld [vmem:[%s1880_s13 + $0xa0] sm:$0xff] }
  0x1e   : > { %1732 = vmatpush3.bf16.msra.mxu0 %v1729_v19  ;;  %v482_v61 = vld [vmem:[%s1880_s13 + $0x190] sm:$0xff]  ;;  %v483_v63 = vld [vmem:[%s1880_s13 + $0x198] sm:$0xff]  ;;  %v484_v1 = vld [vmem:[%s1880_s13 + $0x1a0] sm:$0xff] }
  0x1f   : > { %1754 = vmatpush3.bf16.msra.mxu1 %v1729_v19  ;;  %1734 = vmatprep.subr.bf16.mxu0 %v1733_v22  ;;  %v453_v2 = vld [vmem:[%s1880_s13 + $0xa8] sm:$0xff]  ;;  %v454_v4 = vld [vmem:[%s1880_s13 + $0xb0] sm:$0xff]  ;;  %v455_v6 = vld [vmem:[%s1880_s13 + $0xb8] sm:$0xff] }
  0x20   : > { %1747 = vmatprep.subr.bf16.mxu1 %v1733_v22  ;;  %v485_v3 = vld [vmem:[%s1880_s13 + $0x1a8] sm:$0xff]  ;;  %v486_v5 = vld [vmem:[%s1880_s13 + $0x1b0] sm:$0xff]  ;;  %v487_v7 = vld [vmem:[%s1880_s13 + $0x1b8] sm:$0xff] }
  0x21   : > { %v456_v8 = vld [vmem:[%s1880_s13 + $0xc0] sm:$0xff]  ;;  %v457_v10 = vld [vmem:[%s1880_s13 + $0xc8] sm:$0xff]  ;;  %v458_v12 = vld [vmem:[%s1880_s13 + $0xd0] sm:$0xff] }
  0x22   : > { %1736 = vmatpush3.bf16.msra.mxu0 %v1733_v22  ;;  %v488_v9 = vld [vmem:[%s1880_s13 + $0x1c0] sm:$0xff]  ;;  %v489_v11 = vld [vmem:[%s1880_s13 + $0x1c8] sm:$0xff]  ;;  %v490_v13 = vld [vmem:[%s1880_s13 + $0x1d0] sm:$0xff] }
  0x23   : > { %1755 = vmatpush3.bf16.msra.mxu1 %v1733_v22  ;;  %1738 = vmatprep.subr.bf16.mxu0 %v1737_v25  ;;  %v459_v14 = vld [vmem:[%s1880_s13 + $0xd8] sm:$0xff]  ;;  %v460_v16 = vld [vmem:[%s1880_s13 + $0xe0] sm:$0xff]  ;;  %v461_v18 = vld [vmem:[%s1880_s13 + $0xe8] sm:$0xff] }
  0x24   : > { %1748 = vmatprep.subr.bf16.mxu1 %v1737_v25  ;;  %v491_v15 = vld [vmem:[%s1880_s13 + $0x1d8] sm:$0xff]  ;;  %v492_v17 = vld [vmem:[%s1880_s13 + $0x1e0] sm:$0xff]  ;;  %v493_v19 = vld [vmem:[%s1880_s13 + $0x1e8] sm:$0xff] }
  0x25   : > { %v462_v20 = vld [vmem:[%s1880_s13 + $0xf0] sm:$0xff]  ;;  %v463_v22 = vld [vmem:[%s1880_s13 + $0xf8] sm:$0xff] }
  0x26   : > { %1740 = vmatpush3.bf16.msra.mxu0 %v1737_v25  ;;  %v494_v21 = vld [vmem:[%s1880_s13 + $0x1f0] sm:$0xff]  ;;  %v495_v23 = vld [vmem:[%s1880_s13 + $0x1f8] sm:$0xff] }
  0x27   : > { %1756 = vmatpush3.bf16.msra.mxu1 %v1737_v25 }
  0x29   : > { %1614 = vmatmul.mubr.f32.vlgmr.msra.gmra.mrb[0].mxu0 %v433_v26  ;;  %v1978_v26 = vld [vmem:[%s2191_s3] ss:$0 sm:$0xff] }
  0x2a   : > { %1662 = vmatmul.mubr.f32.vlgmr.msra.gmra.mrb[0].mxu1 %v465_v27  ;;  %1616 = vmatprep.mubr.f32.mxu0 %v434_v28 }
  0x2b   : > { %1664 = vmatprep.mubr.f32.mxu1 %v466_v29 }
  0x2d   : > { %1617 = vmatmul.mubr.f32.gmra.mrb[2].mxu0 %v435_v30 }
  0x2e   : > { %1665 = vmatmul.mubr.f32.gmra.mrb[2].mxu1 %v467_v31  ;;  %1619 = vmatprep.mubr.f32.mxu0 %v436_v32 }
  0x2f   : > { %1667 = vmatprep.mubr.f32.mxu1 %v468_v33 }
  0x31   : > { %1620 = vmatmul.mubr.f32.gmra.mrb[4].mxu0 %v437_v34 }
  0x32   : > { %1668 = vmatmul.mubr.f32.gmra.mrb[4].mxu1 %v469_v35  ;;  %1622 = vmatprep.mubr.f32.mxu0 %v438_v36 }
  0x33   : > { %1670 = vmatprep.mubr.f32.mxu1 %v470_v37 }
  0x35   : > { %1623 = vmatmul.mubr.f32.gmra.mrb[6].mxu0 %v439_v38 }
  0x36   : > { %1671 = vmatmul.mubr.f32.gmra.mrb[6].mxu1 %v471_v39  ;;  %1625 = vmatprep.mubr.f32.mxu0 %v440_v40 }
  0x37   : > { %1673 = vmatprep.mubr.f32.mxu1 %v472_v41 }
  0x39   : > { %1626 = vmatmul.mubr.f32.gmra.mrb[8].mxu0 %v441_v42 }
  0x3a   : > { %1674 = vmatmul.mubr.f32.gmra.mrb[8].mxu1 %v473_v43  ;;  %1628 = vmatprep.mubr.f32.mxu0 %v442_v44 }
  0x3b   : > { %1676 = vmatprep.mubr.f32.mxu1 %v474_v45 }
  0x3d   : > { %1629 = vmatmul.mubr.f32.gmra.mrb[10].mxu0 %v443_v46 }
  0x3e   : > { %1677 = vmatmul.mubr.f32.gmra.mrb[10].mxu1 %v475_v47  ;;  %1631 = vmatprep.mubr.f32.mxu0 %v444_v48 }
  0x3f   : > { %1679 = vmatprep.mubr.f32.mxu1 %v476_v49 }
  0x41   : > { %1632 = vmatmul.mubr.f32.gmra.mrb[12].mxu0 %v445_v50 }
  0x42   : > { %1680 = vmatmul.mubr.f32.gmra.mrb[12].mxu1 %v477_v51  ;;  %1634 = vmatprep.mubr.f32.mxu0 %v446_v52 }
  0x43   : > { %1682 = vmatprep.mubr.f32.mxu1 %v478_v53 }
  0x45   : > { %1635 = vmatmul.mubr.f32.gmra.mrb[14].mxu0 %v447_v54 }
  0x46   : > { %1683 = vmatmul.mubr.f32.gmra.mrb[14].mxu1 %v479_v55  ;;  %1637 = vmatprep.mubr.f32.mxu0 %v448_v56 }
  0x47   : > { %1685 = vmatprep.mubr.f32.mxu1 %v480_v57 }
  0x49   : > { %1638 = vmatmul.mubr.f32.gmra.mrb[16].mxu0 %v449_v58 }
  0x4a   : > { %1686 = vmatmul.mubr.f32.gmra.mrb[16].mxu1 %v481_v59  ;;  %1640 = vmatprep.mubr.f32.mxu0 %v450_v60 }
  0x4b   : > { %1688 = vmatprep.mubr.f32.mxu1 %v482_v61 }
  0x4d   : > { %1641 = vmatmul.mubr.f32.gmra.mrb[18].mxu0 %v451_v62 }
  0x4e   : > { %1689 = vmatmul.mubr.f32.gmra.mrb[18].mxu1 %v483_v63  ;;  %1643 = vmatprep.mubr.f32.mxu0 %v452_v0 }
  0x4f   : > { %1691 = vmatprep.mubr.f32.mxu1 %v484_v1 }
  0x51   : > { %1644 = vmatmul.mubr.f32.gmra.mrb[20].mxu0 %v453_v2 }
  0x52   : > { %1692 = vmatmul.mubr.f32.gmra.mrb[20].mxu1 %v485_v3  ;;  %1646 = vmatprep.mubr.f32.mxu0 %v454_v4 }
  0x53   : > { %1694 = vmatprep.mubr.f32.mxu1 %v486_v5 }
  0x55   : > { %1647 = vmatmul.mubr.f32.gmra.mrb[22].mxu0 %v455_v6 }
  0x56   : > { %1695 = vmatmul.mubr.f32.gmra.mrb[22].mxu1 %v487_v7  ;;  %1649 = vmatprep.mubr.f32.mxu0 %v456_v8 }
  0x57   : > { %1697 = vmatprep.mubr.f32.mxu1 %v488_v9 }
  0x59   : > { %1650 = vmatmul.mubr.f32.gmra.mrb[24].mxu0 %v457_v10 }
  0x5a   : > { %1698 = vmatmul.mubr.f32.gmra.mrb[24].mxu1 %v489_v11  ;;  %1652 = vmatprep.mubr.f32.mxu0 %v458_v12 }
  0x5b   : > { %1700 = vmatprep.mubr.f32.mxu1 %v490_v13 }
  0x5d   : > { %1653 = vmatmul.mubr.f32.gmra.mrb[26].mxu0 %v459_v14 }
  0x5e   : > { %1701 = vmatmul.mubr.f32.gmra.mrb[26].mxu1 %v491_v15  ;;  %1655 = vmatprep.mubr.f32.mxu0 %v460_v16 }
  0x5f   : > { %1703 = vmatprep.mubr.f32.mxu1 %v492_v17 }
  0x61   : > { %1656 = vmatmul.mubr.f32.gmra.mrb[28].mxu0 %v461_v18 }
  0x62   : > { %1704 = vmatmul.mubr.f32.gmra.mrb[28].mxu1 %v493_v19  ;;  %1658 = vmatprep.mubr.f32.mxu0 %v462_v20 }
  0x63   : > { %1706 = vmatprep.mubr.f32.mxu1 %v494_v21 }
  0x65   : > { %1659 = vmatmul.mubr.f32.gmra.mrb[30].mxu0 %v463_v22 }
  0x66   : > { %1707 = vmatmul.mubr.f32.gmra.mrb[30].mxu1 %v495_v23 }
  0xfc   : > { %v1615_v25 = vpop.f32.mrb[0].mxu0 }
  0xfd   : > { %v1663_v27 = vpop.f32.mrb[0].mxu1  ;;  %v1100_v28 = vmul.f32 %v1615_v25, %v1973_v24  ;;  %v578_v30 = vpop.f32.mrb[1].mxu0 }
  0xfe   : > { %v1132_v29 = vmul.f32 %v1663_v27, %v1973_v24  ;;  %v738_v31 = vpop.f32.mrb[1].mxu1  ;;  %v1099_v32 = vmul.f32 %v1973_v24, %v578_v30 }
  0xff   : > { %v1131_v33 = vmul.f32 %v1973_v24, %v738_v31  ;;  %v1171_v34 = vadd.f32 %v1978_v26, %v1100_v28 }
 0x100   : > { %v1203_v35 = vadd.f32 %v1978_v26, %v1132_v29  ;;  %v1170_v36 = vadd.f32 %v1978_v26, %v1099_v32  ;;  %v1618_v38 = vpop.f32.mrb[2].mxu0 }
 0x101   : > { %v1202_v37 = vadd.f32 %v1978_v26, %v1131_v33  ;;  %v1666_v39 = vpop.f32.mrb[2].mxu1  ;;  %v1235_v40 = vmax.f32 %v1171_v34, 0.0  ;;  %v1102_v42 = vmul.f32 %v1618_v38, %v1973_v24  ;;  %v588_v44 = vpop.f32.mrb[3].mxu0 }
 0x102   : > { %v1267_v41 = vmax.f32 %v1203_v35, 0.0  ;;  %v1134_v43 = vmul.f32 %v1666_v39, %v1973_v24  ;;  %v748_v45 = vpop.f32.mrb[3].mxu1  ;;  %v1234_v46 = vmax.f32 %v1170_v36, 0.0  ;;  %v1101_v48 = vmul.f32 %v1973_v24, %v588_v44 }
 0x103   : > { %v1266_v47 = vmax.f32 %v1202_v37, 0.0  ;;  %v1133_v49 = vmul.f32 %v1973_v24, %v748_v45  ;;  %1299 = vst [vmem:[%s1991_s15 + $0x8] sm:$0xff] %v1235_v40  ;;  %v1173_v50 = vadd.f32 %v1978_v26, %v1102_v42 }
 0x104   : > { %1331 = vst [vmem:[%s1991_s15 + $0x108] sm:$0xff] %v1267_v41  ;;  %v1205_v51 = vadd.f32 %v1978_v26, %v1134_v43  ;;  %1298 = vst [vmem:[%s1991_s15] sm:$0xff] %v1234_v46  ;;  %v1172_v52 = vadd.f32 %v1978_v26, %v1101_v48  ;;  %v1621_v54 = vpop.f32.mrb[4].mxu0 }
 0x105   : > { %1330 = vst [vmem:[%s1991_s15 + $0x100] sm:$0xff] %v1266_v47  ;;  %v1204_v53 = vadd.f32 %v1978_v26, %v1133_v49  ;;  %v1669_v55 = vpop.f32.mrb[4].mxu1  ;;  %v1237_v56 = vmax.f32 %v1173_v50, 0.0  ;;  %v1104_v58 = vmul.f32 %v1621_v54, %v1973_v24  ;;  %v598_v60 = vpop.f32.mrb[5].mxu0 }
 0x106   : > { %v1269_v57 = vmax.f32 %v1205_v51, 0.0  ;;  %v1136_v59 = vmul.f32 %v1669_v55, %v1973_v24  ;;  %v758_v61 = vpop.f32.mrb[5].mxu1  ;;  %v1236_v62 = vmax.f32 %v1172_v52, 0.0  ;;  %v1103_v0 = vmul.f32 %v1973_v24, %v598_v60 }
 0x107   : > { %v1268_v63 = vmax.f32 %v1204_v53, 0.0  ;;  %v1135_v1 = vmul.f32 %v1973_v24, %v758_v61  ;;  %1301 = vst [vmem:[%s1991_s15 + $0x18] sm:$0xff] %v1237_v56  ;;  %v1175_v2 = vadd.f32 %v1978_v26, %v1104_v58 }
 0x108   : > { %1333 = vst [vmem:[%s1991_s15 + $0x118] sm:$0xff] %v1269_v57  ;;  %v1207_v3 = vadd.f32 %v1978_v26, %v1136_v59  ;;  %1300 = vst [vmem:[%s1991_s15 + $0x10] sm:$0xff] %v1236_v62  ;;  %v1174_v4 = vadd.f32 %v1978_v26, %v1103_v0  ;;  %v1624_v6 = vpop.f32.mrb[6].mxu0 }
 0x109   : > { %1332 = vst [vmem:[%s1991_s15 + $0x110] sm:$0xff] %v1268_v63  ;;  %v1206_v5 = vadd.f32 %v1978_v26, %v1135_v1  ;;  %v1672_v7 = vpop.f32.mrb[6].mxu1  ;;  %v1239_v8 = vmax.f32 %v1175_v2, 0.0  ;;  %v1106_v10 = vmul.f32 %v1624_v6, %v1973_v24  ;;  %v608_v12 = vpop.f32.mrb[7].mxu0 }
 0x10a   : > { %v1271_v9 = vmax.f32 %v1207_v3, 0.0  ;;  %v1138_v11 = vmul.f32 %v1672_v7, %v1973_v24  ;;  %v768_v13 = vpop.f32.mrb[7].mxu1  ;;  %v1238_v14 = vmax.f32 %v1174_v4, 0.0  ;;  %v1105_v16 = vmul.f32 %v1973_v24, %v608_v12 }
 0x10b   : > { %v1270_v15 = vmax.f32 %v1206_v5, 0.0  ;;  %v1137_v17 = vmul.f32 %v1973_v24, %v768_v13  ;;  %1303 = vst [vmem:[%s1991_s15 + $0x28] sm:$0xff] %v1239_v8  ;;  %v1177_v18 = vadd.f32 %v1978_v26, %v1106_v10 }
 0x10c   : > { %1335 = vst [vmem:[%s1991_s15 + $0x128] sm:$0xff] %v1271_v9  ;;  %v1209_v19 = vadd.f32 %v1978_v26, %v1138_v11  ;;  %1302 = vst [vmem:[%s1991_s15 + $0x20] sm:$0xff] %v1238_v14  ;;  %v1176_v20 = vadd.f32 %v1978_v26, %v1105_v16  ;;  %v1627_v22 = vpop.f32.mrb[8].mxu0 }
 0x10d   : > { %1334 = vst [vmem:[%s1991_s15 + $0x120] sm:$0xff] %v1270_v15  ;;  %v1208_v21 = vadd.f32 %v1978_v26, %v1137_v17  ;;  %v1675_v23 = vpop.f32.mrb[8].mxu1  ;;  %v1241_v25 = vmax.f32 %v1177_v18, 0.0  ;;  %v1108_v28 = vmul.f32 %v1627_v22, %v1973_v24  ;;  %v618_v30 = vpop.f32.mrb[9].mxu0 }
 0x10e   : > { %v1273_v27 = vmax.f32 %v1209_v19, 0.0  ;;  %v1140_v29 = vmul.f32 %v1675_v23, %v1973_v24  ;;  %v778_v31 = vpop.f32.mrb[9].mxu1  ;;  %v1240_v32 = vmax.f32 %v1176_v20, 0.0  ;;  %v1107_v34 = vmul.f32 %v1973_v24, %v618_v30 }
 0x10f   : > { %v1272_v33 = vmax.f32 %v1208_v21, 0.0  ;;  %v1139_v35 = vmul.f32 %v1973_v24, %v778_v31  ;;  %1305 = vst [vmem:[%s1991_s15 + $0x38] sm:$0xff] %v1241_v25  ;;  %v1179_v36 = vadd.f32 %v1978_v26, %v1108_v28 }
 0x110   : > { %1337 = vst [vmem:[%s1991_s15 + $0x138] sm:$0xff] %v1273_v27  ;;  %v1211_v37 = vadd.f32 %v1978_v26, %v1140_v29  ;;  %1304 = vst [vmem:[%s1991_s15 + $0x30] sm:$0xff] %v1240_v32  ;;  %v1178_v38 = vadd.f32 %v1978_v26, %v1107_v34  ;;  %v1630_v40 = vpop.f32.mrb[10].mxu0 }
 0x111   : > { %1336 = vst [vmem:[%s1991_s15 + $0x130] sm:$0xff] %v1272_v33  ;;  %v1210_v39 = vadd.f32 %v1978_v26, %v1139_v35  ;;  %v1678_v41 = vpop.f32.mrb[10].mxu1  ;;  %v1243_v42 = vmax.f32 %v1179_v36, 0.0  ;;  %v1110_v44 = vmul.f32 %v1630_v40, %v1973_v24  ;;  %v628_v46 = vpop.f32.mrb[11].mxu0 }
 0x112   : > { %v1275_v43 = vmax.f32 %v1211_v37, 0.0  ;;  %v1142_v45 = vmul.f32 %v1678_v41, %v1973_v24  ;;  %v788_v47 = vpop.f32.mrb[11].mxu1  ;;  %v1242_v48 = vmax.f32 %v1178_v38, 0.0  ;;  %v1109_v50 = vmul.f32 %v1973_v24, %v628_v46 }
 0x113   : > { %v1274_v49 = vmax.f32 %v1210_v39, 0.0  ;;  %v1141_v51 = vmul.f32 %v1973_v24, %v788_v47  ;;  %1307 = vst [vmem:[%s1991_s15 + $0x48] sm:$0xff] %v1243_v42  ;;  %v1181_v52 = vadd.f32 %v1978_v26, %v1110_v44 }
 0x114   : > { %1339 = vst [vmem:[%s1991_s15 + $0x148] sm:$0xff] %v1275_v43  ;;  %v1213_v53 = vadd.f32 %v1978_v26, %v1142_v45  ;;  %1306 = vst [vmem:[%s1991_s15 + $0x40] sm:$0xff] %v1242_v48  ;;  %v1180_v54 = vadd.f32 %v1978_v26, %v1109_v50  ;;  %v1633_v56 = vpop.f32.mrb[12].mxu0 }
 0x115   : > { %1338 = vst [vmem:[%s1991_s15 + $0x140] sm:$0xff] %v1274_v49  ;;  %v1212_v55 = vadd.f32 %v1978_v26, %v1141_v51  ;;  %v1681_v57 = vpop.f32.mrb[12].mxu1  ;;  %v1245_v58 = vmax.f32 %v1181_v52, 0.0  ;;  %v1112_v60 = vmul.f32 %v1633_v56, %v1973_v24  ;;  %v638_v62 = vpop.f32.mrb[13].mxu0 }
 0x116   : > { %v1277_v59 = vmax.f32 %v1213_v53, 0.0  ;;  %v1144_v61 = vmul.f32 %v1681_v57, %v1973_v24  ;;  %v798_v63 = vpop.f32.mrb[13].mxu1  ;;  %v1244_v0 = vmax.f32 %v1180_v54, 0.0  ;;  %v1111_v2 = vmul.f32 %v1973_v24, %v638_v62 }
 0x117   : > { %v1276_v1 = vmax.f32 %v1212_v55, 0.0  ;;  %v1143_v3 = vmul.f32 %v1973_v24, %v798_v63  ;;  %1309 = vst [vmem:[%s1991_s15 + $0x58] sm:$0xff] %v1245_v58  ;;  %v1183_v4 = vadd.f32 %v1978_v26, %v1112_v60 }
 0x118   : > { %1341 = vst [vmem:[%s1991_s15 + $0x158] sm:$0xff] %v1277_v59  ;;  %v1215_v5 = vadd.f32 %v1978_v26, %v1144_v61  ;;  %1308 = vst [vmem:[%s1991_s15 + $0x50] sm:$0xff] %v1244_v0  ;;  %v1182_v6 = vadd.f32 %v1978_v26, %v1111_v2  ;;  %v1636_v8 = vpop.f32.mrb[14].mxu0 }
 0x119   : > { %1340 = vst [vmem:[%s1991_s15 + $0x150] sm:$0xff] %v1276_v1  ;;  %v1214_v7 = vadd.f32 %v1978_v26, %v1143_v3  ;;  %v1684_v9 = vpop.f32.mrb[14].mxu1  ;;  %v1247_v10 = vmax.f32 %v1183_v4, 0.0  ;;  %v1114_v12 = vmul.f32 %v1636_v8, %v1973_v24  ;;  %v648_v14 = vpop.f32.mrb[15].mxu0 }
 0x11a   : > { %v1279_v11 = vmax.f32 %v1215_v5, 0.0  ;;  %v1146_v13 = vmul.f32 %v1684_v9, %v1973_v24  ;;  %v808_v15 = vpop.f32.mrb[15].mxu1  ;;  %v1246_v16 = vmax.f32 %v1182_v6, 0.0  ;;  %v1113_v18 = vmul.f32 %v1973_v24, %v648_v14 }
 0x11b   : > { %v1278_v17 = vmax.f32 %v1214_v7, 0.0  ;;  %v1145_v19 = vmul.f32 %v1973_v24, %v808_v15  ;;  %1311 = vst [vmem:[%s1991_s15 + $0x68] sm:$0xff] %v1247_v10  ;;  %v1185_v20 = vadd.f32 %v1978_v26, %v1114_v12 }
 0x11c   : > { %1343 = vst [vmem:[%s1991_s15 + $0x168] sm:$0xff] %v1279_v11  ;;  %v1217_v21 = vadd.f32 %v1978_v26, %v1146_v13  ;;  %1310 = vst [vmem:[%s1991_s15 + $0x60] sm:$0xff] %v1246_v16  ;;  %v1184_v22 = vadd.f32 %v1978_v26, %v1113_v18  ;;  %v1639_v25 = vpop.f32.mrb[16].mxu0 }
 0x11d   : > { %1342 = vst [vmem:[%s1991_s15 + $0x160] sm:$0xff] %v1278_v17  ;;  %v1216_v23 = vadd.f32 %v1978_v26, %v1145_v19  ;;  %v1687_v27 = vpop.f32.mrb[16].mxu1  ;;  %v1249_v28 = vmax.f32 %v1185_v20, 0.0  ;;  %v1116_v30 = vmul.f32 %v1639_v25, %v1973_v24  ;;  %v658_v32 = vpop.f32.mrb[17].mxu0 }
 0x11e   : > { %v1281_v29 = vmax.f32 %v1217_v21, 0.0  ;;  %v1148_v31 = vmul.f32 %v1687_v27, %v1973_v24  ;;  %v818_v33 = vpop.f32.mrb[17].mxu1  ;;  %v1248_v34 = vmax.f32 %v1184_v22, 0.0  ;;  %v1115_v36 = vmul.f32 %v1973_v24, %v658_v32 }
 0x11f   : > { %v1280_v35 = vmax.f32 %v1216_v23, 0.0  ;;  %v1147_v37 = vmul.f32 %v1973_v24, %v818_v33  ;;  %1313 = vst [vmem:[%s1991_s15 + $0x78] sm:$0xff] %v1249_v28  ;;  %v1187_v38 = vadd.f32 %v1978_v26, %v1116_v30 }
 0x120   : > { %1345 = vst [vmem:[%s1991_s15 + $0x178] sm:$0xff] %v1281_v29  ;;  %v1219_v39 = vadd.f32 %v1978_v26, %v1148_v31  ;;  %1312 = vst [vmem:[%s1991_s15 + $0x70] sm:$0xff] %v1248_v34  ;;  %v1186_v40 = vadd.f32 %v1978_v26, %v1115_v36  ;;  %v1642_v42 = vpop.f32.mrb[18].mxu0 }
 0x121   : > { %1344 = vst [vmem:[%s1991_s15 + $0x170] sm:$0xff] %v1280_v35  ;;  %v1218_v41 = vadd.f32 %v1978_v26, %v1147_v37  ;;  %v1690_v43 = vpop.f32.mrb[18].mxu1  ;;  %v1251_v44 = vmax.f32 %v1187_v38, 0.0  ;;  %v1118_v46 = vmul.f32 %v1642_v42, %v1973_v24  ;;  %v668_v48 = vpop.f32.mrb[19].mxu0 }
 0x122   : > { %v1283_v45 = vmax.f32 %v1219_v39, 0.0  ;;  %v1150_v47 = vmul.f32 %v1690_v43, %v1973_v24  ;;  %v828_v49 = vpop.f32.mrb[19].mxu1  ;;  %v1250_v50 = vmax.f32 %v1186_v40, 0.0  ;;  %v1117_v52 = vmul.f32 %v1973_v24, %v668_v48 }
 0x123   : > { %v1282_v51 = vmax.f32 %v1218_v41, 0.0  ;;  %v1149_v53 = vmul.f32 %v1973_v24, %v828_v49  ;;  %1315 = vst [vmem:[%s1991_s15 + $0x88] sm:$0xff] %v1251_v44  ;;  %v1189_v54 = vadd.f32 %v1978_v26, %v1118_v46 }
 0x124   : > { %1347 = vst [vmem:[%s1991_s15 + $0x188] sm:$0xff] %v1283_v45  ;;  %v1221_v55 = vadd.f32 %v1978_v26, %v1150_v47  ;;  %1314 = vst [vmem:[%s1991_s15 + $0x80] sm:$0xff] %v1250_v50  ;;  %v1188_v56 = vadd.f32 %v1978_v26, %v1117_v52  ;;  %v1645_v58 = vpop.f32.mrb[20].mxu0 }
 0x125   : > { %1346 = vst [vmem:[%s1991_s15 + $0x180] sm:$0xff] %v1282_v51  ;;  %v1220_v57 = vadd.f32 %v1978_v26, %v1149_v53  ;;  %v1693_v59 = vpop.f32.mrb[20].mxu1  ;;  %v1253_v60 = vmax.f32 %v1189_v54, 0.0  ;;  %v1120_v62 = vmul.f32 %v1645_v58, %v1973_v24  ;;  %v678_v0 = vpop.f32.mrb[21].mxu0 }
 0x126   : > { %v1285_v61 = vmax.f32 %v1221_v55, 0.0  ;;  %v1152_v63 = vmul.f32 %v1693_v59, %v1973_v24  ;;  %v838_v1 = vpop.f32.mrb[21].mxu1  ;;  %v1252_v2 = vmax.f32 %v1188_v56, 0.0  ;;  %v1119_v4 = vmul.f32 %v1973_v24, %v678_v0 }
 0x127   : > { %v1284_v3 = vmax.f32 %v1220_v57, 0.0  ;;  %v1151_v5 = vmul.f32 %v1973_v24, %v838_v1  ;;  %1317 = vst [vmem:[%s1991_s15 + $0x98] sm:$0xff] %v1253_v60  ;;  %v1191_v6 = vadd.f32 %v1978_v26, %v1120_v62 }
 0x128   : > { %1349 = vst [vmem:[%s1991_s15 + $0x198] sm:$0xff] %v1285_v61  ;;  %v1223_v7 = vadd.f32 %v1978_v26, %v1152_v63  ;;  %1316 = vst [vmem:[%s1991_s15 + $0x90] sm:$0xff] %v1252_v2  ;;  %v1190_v8 = vadd.f32 %v1978_v26, %v1119_v4  ;;  %v1648_v10 = vpop.f32.mrb[22].mxu0 }
 0x129   : > { %1348 = vst [vmem:[%s1991_s15 + $0x190] sm:$0xff] %v1284_v3  ;;  %v1222_v9 = vadd.f32 %v1978_v26, %v1151_v5  ;;  %v1696_v11 = vpop.f32.mrb[22].mxu1  ;;  %v1255_v12 = vmax.f32 %v1191_v6, 0.0  ;;  %v1122_v14 = vmul.f32 %v1648_v10, %v1973_v24  ;;  %v688_v16 = vpop.f32.mrb[23].mxu0 }
 0x12a   : > { %v1287_v13 = vmax.f32 %v1223_v7, 0.0  ;;  %v1154_v15 = vmul.f32 %v1696_v11, %v1973_v24  ;;  %v848_v17 = vpop.f32.mrb[23].mxu1  ;;  %v1254_v18 = vmax.f32 %v1190_v8, 0.0  ;;  %v1121_v20 = vmul.f32 %v1973_v24, %v688_v16 }
 0x12b   : > { %v1286_v19 = vmax.f32 %v1222_v9, 0.0  ;;  %v1153_v21 = vmul.f32 %v1973_v24, %v848_v17  ;;  %1319 = vst [vmem:[%s1991_s15 + $0xa8] sm:$0xff] %v1255_v12  ;;  %v1193_v22 = vadd.f32 %v1978_v26, %v1122_v14 }
 0x12c   : > { %1351 = vst [vmem:[%s1991_s15 + $0x1a8] sm:$0xff] %v1287_v13  ;;  %v1225_v23 = vadd.f32 %v1978_v26, %v1154_v15  ;;  %1318 = vst [vmem:[%s1991_s15 + $0xa0] sm:$0xff] %v1254_v18  ;;  %v1192_v25 = vadd.f32 %v1978_v26, %v1121_v20  ;;  %v1651_v28 = vpop.f32.mrb[24].mxu0 }
 0x12d   : > { %1350 = vst [vmem:[%s1991_s15 + $0x1a0] sm:$0xff] %v1286_v19  ;;  %v1224_v27 = vadd.f32 %v1978_v26, %v1153_v21  ;;  %v1699_v29 = vpop.f32.mrb[24].mxu1  ;;  %v1257_v30 = vmax.f32 %v1193_v22, 0.0  ;;  %v1124_v32 = vmul.f32 %v1651_v28, %v1973_v24  ;;  %v698_v34 = vpop.f32.mrb[25].mxu0 }
 0x12e   : > { %v1289_v31 = vmax.f32 %v1225_v23, 0.0  ;;  %v1156_v33 = vmul.f32 %v1699_v29, %v1973_v24  ;;  %v858_v35 = vpop.f32.mrb[25].mxu1  ;;  %v1256_v36 = vmax.f32 %v1192_v25, 0.0  ;;  %v1123_v38 = vmul.f32 %v1973_v24, %v698_v34 }
 0x12f   : > { %v1288_v37 = vmax.f32 %v1224_v27, 0.0  ;;  %v1155_v39 = vmul.f32 %v1973_v24, %v858_v35  ;;  %1321 = vst [vmem:[%s1991_s15 + $0xb8] sm:$0xff] %v1257_v30  ;;  %v1195_v40 = vadd.f32 %v1978_v26, %v1124_v32 }
 0x130   : > { %1353 = vst [vmem:[%s1991_s15 + $0x1b8] sm:$0xff] %v1289_v31  ;;  %v1227_v41 = vadd.f32 %v1978_v26, %v1156_v33  ;;  %1320 = vst [vmem:[%s1991_s15 + $0xb0] sm:$0xff] %v1256_v36  ;;  %v1194_v42 = vadd.f32 %v1978_v26, %v1123_v38  ;;  %v1654_v44 = vpop.f32.mrb[26].mxu0 }
 0x131   : > { %1352 = vst [vmem:[%s1991_s15 + $0x1b0] sm:$0xff] %v1288_v37  ;;  %v1226_v43 = vadd.f32 %v1978_v26, %v1155_v39  ;;  %v1702_v45 = vpop.f32.mrb[26].mxu1  ;;  %v1259_v46 = vmax.f32 %v1195_v40, 0.0  ;;  %v1126_v48 = vmul.f32 %v1654_v44, %v1973_v24  ;;  %v708_v50 = vpop.f32.mrb[27].mxu0 }
 0x132   : > { %v1291_v47 = vmax.f32 %v1227_v41, 0.0  ;;  %v1158_v49 = vmul.f32 %v1702_v45, %v1973_v24  ;;  %v868_v51 = vpop.f32.mrb[27].mxu1  ;;  %v1258_v52 = vmax.f32 %v1194_v42, 0.0  ;;  %v1125_v54 = vmul.f32 %v1973_v24, %v708_v50 }
 0x133   : > { %v1290_v53 = vmax.f32 %v1226_v43, 0.0  ;;  %v1157_v55 = vmul.f32 %v1973_v24, %v868_v51  ;;  %1323 = vst [vmem:[%s1991_s15 + $0xc8] sm:$0xff] %v1259_v46  ;;  %v1197_v56 = vadd.f32 %v1978_v26, %v1126_v48 }
 0x134   : > { %1355 = vst [vmem:[%s1991_s15 + $0x1c8] sm:$0xff] %v1291_v47  ;;  %v1229_v57 = vadd.f32 %v1978_v26, %v1158_v49  ;;  %1322 = vst [vmem:[%s1991_s15 + $0xc0] sm:$0xff] %v1258_v52  ;;  %v1196_v58 = vadd.f32 %v1978_v26, %v1125_v54  ;;  %v1657_v60 = vpop.f32.mrb[28].mxu0 }
 0x135   : > { %1354 = vst [vmem:[%s1991_s15 + $0x1c0] sm:$0xff] %v1290_v53  ;;  %v1228_v59 = vadd.f32 %v1978_v26, %v1157_v55  ;;  %v1705_v61 = vpop.f32.mrb[28].mxu1  ;;  %v1261_v62 = vmax.f32 %v1197_v56, 0.0  ;;  %v1128_v0 = vmul.f32 %v1657_v60, %v1973_v24  ;;  %v718_v2 = vpop.f32.mrb[29].mxu0 }
 0x136   : > { %v1293_v63 = vmax.f32 %v1229_v57, 0.0  ;;  %v1160_v1 = vmul.f32 %v1705_v61, %v1973_v24  ;;  %v878_v3 = vpop.f32.mrb[29].mxu1  ;;  %v1260_v4 = vmax.f32 %v1196_v58, 0.0  ;;  %v1127_v6 = vmul.f32 %v1973_v24, %v718_v2 }
 0x137   : > { %v1292_v5 = vmax.f32 %v1228_v59, 0.0  ;;  %v1159_v7 = vmul.f32 %v1973_v24, %v878_v3  ;;  %1325 = vst [vmem:[%s1991_s15 + $0xd8] sm:$0xff] %v1261_v62  ;;  %v1199_v8 = vadd.f32 %v1978_v26, %v1128_v0 }
 0x138   : > { %1357 = vst [vmem:[%s1991_s15 + $0x1d8] sm:$0xff] %v1293_v63  ;;  %v1231_v9 = vadd.f32 %v1978_v26, %v1160_v1  ;;  %1324 = vst [vmem:[%s1991_s15 + $0xd0] sm:$0xff] %v1260_v4  ;;  %v1198_v10 = vadd.f32 %v1978_v26, %v1127_v6  ;;  %v1660_v12 = vpop.f32.mrb[30].mxu0 }
 0x139   : > { %1356 = vst [vmem:[%s1991_s15 + $0x1d0] sm:$0xff] %v1292_v5  ;;  %v1230_v11 = vadd.f32 %v1978_v26, %v1159_v7  ;;  %v1708_v13 = vpop.f32.mrb[30].mxu1  ;;  %v1263_v14 = vmax.f32 %v1199_v8, 0.0  ;;  %v1130_v16 = vmul.f32 %v1660_v12, %v1973_v24  ;;  %v728_v18 = vpop.f32.mrb[31].mxu0 }
 0x13a   : > { %v1295_v15 = vmax.f32 %v1231_v9, 0.0  ;;  %v1162_v17 = vmul.f32 %v1708_v13, %v1973_v24  ;;  %v888_v19 = vpop.f32.mrb[31].mxu1  ;;  %v1262_v20 = vmax.f32 %v1198_v10, 0.0  ;;  %v1129_v22 = vmul.f32 %v1973_v24, %v728_v18 }
 0x13b   : > { %v1294_v21 = vmax.f32 %v1230_v11, 0.0  ;;  %v1161_v23 = vmul.f32 %v1973_v24, %v888_v19  ;;  %1327 = vst [vmem:[%s1991_s15 + $0xe8] sm:$0xff] %v1263_v14  ;;  %v1201_v25 = vadd.f32 %v1978_v26, %v1130_v16 }
 0x13c   : > { %1359 = vst [vmem:[%s1991_s15 + $0x1e8] sm:$0xff] %v1295_v15  ;;  %v1233_v27 = vadd.f32 %v1978_v26, %v1162_v17  ;;  %1326 = vst [vmem:[%s1991_s15 + $0xe0] sm:$0xff] %v1262_v20  ;;  %v1200_v28 = vadd.f32 %v1978_v26, %v1129_v22 }
 0x13d   : > { %1358 = vst [vmem:[%s1991_s15 + $0x1e0] sm:$0xff] %v1294_v21  ;;  %v1232_v29 = vadd.f32 %v1978_v26, %v1161_v23  ;;  %v1265_v30 = vmax.f32 %v1201_v25, 0.0 }
 0x13e   : > { %v1297_v31 = vmax.f32 %v1233_v27, 0.0  ;;  %v1264_v32 = vmax.f32 %v1200_v28, 0.0 }
 0x13f   : > { %v1296_v33 = vmax.f32 %v1232_v29, 0.0  ;;  %1329 = vst [vmem:[%s1991_s15 + $0xf8] sm:$0xff] %v1265_v30 }
 0x140   : > { %1361 = vst [vmem:[%s1991_s15 + $0x1f8] sm:$0xff] %v1297_v31  ;;  %1328 = vst [vmem:[%s1991_s15 + $0xf0] sm:$0xff] %v1264_v32 }
 0x141   : > { %1360 = vst [vmem:[%s1991_s15 + $0x1f0] sm:$0xff] %v1296_v33 }
 0x142 PF: > { %s14_s17 = sadd.s32 1, %s1803_s17   ;;  %s2193_s15 = smov %s1799_s16 }
 0x143   : > { %p11_p5 = scmp.ge.s32.totalorder %s14_s17, 6   ;;  %s2194_s16 = smov %s2196_s18 }
 0x145   :  { %13 = sbr.rel (!%p11_p5) target bundleno = 2 (0x2), region = 83 }

// kernel: unet_decoder_block_forward.3
= control target key start
LH: loop header
LB: loop body
LE: loop exit
PB: predicated region body
PF: predicated region fallthrough
CT: control target
= control target key end

     0   :  { %s1877_s15 = smov 0   ;;  %s1879_s16 = smov 0   ;;  %s2376_s0 = inlined_call_operand.vmem [shape: f32[2048,256], index: 0, kind: input, shape index: {}]   ;;  %s2377_s1 = inlined_call_operand.vmem [shape: f32[256,128], index: 1, kind: input, shape index: {}]   ;;  %s2378_s2 = inlined_call_operand.vmem [shape: f32[1,128], index: 2, kind: input, shape index: {}]   ;;  %s2379_s3 = inlined_call_operand.vmem [shape: f32[1,128], index: 3, kind: input, shape index: {}]   ;;  %s2380_s4 = inlined_call_operand.vmem [shape: f32[2048,128], index: 4, kind: output, shape index: {}]  }
   0x1   :  { %s1881_s17 = smov 0  }
   0x2 LB: > { %s33_s18 = sadd.s32 1, %s1845_s16  ;;  %p1711_p0 = scmp.ge.s32.totalorder %s1849_s17, 1  ;;  %s1849_s17 = sphi %s1881_s17, %s14_s17   ;;  %s1845_s16 = sphi %s1879_s16, %s2382_s16   ;;  %s1841_s15 = sphi %s1877_s15, %s2381_s15  }
   0x3   : > { %p35_p1 = scmp.ge.s32.totalorder %s33_s18, 4  ;;  %p224_p2 = scmp.lt.s32.totalorder %s1849_s17, 5 }
   0x5   : > { %s2384_s18 = smov (%p35_p1, %s33_s18), 0  ;;  %p225_p3 = pnand %p1711_p0, %p224_p2 }
   0x6   : > { %v568_v0 = vld [vmem:[%s2377_s1] sm:$0xff] (!%p225_p3)  ;;  %v569_v1 = vld [vmem:[%s2377_s1 + $0x8] sm:$0xff] (!%p225_p3)  ;;  %v570_v2 = vld [vmem:[%s2377_s1 + $0x10] sm:$0xff] (!%p225_p3)  ;;  %s1712_s25 = sshll.u32 (!%p225_p3), %s1841_s15, 6  ;;  %v1851_v3 = vmov (!%p225_p3), 0.0|0.0  }
   0x7   : > { %228 = sbr.rel (%p225_p3) target bundleno = 417 (0x1a1), region = 36  ;;  %1722 = vmatprep.subr.bf16.mxu0 (!%p225_p3), %v1851_v3  ;;  %1770 = vmatprep.subr.bf16.mxu1 (!%p225_p3), %v1851_v3  ;;  %v1723_v4 = vpack.c.bf16 (!%p225_p3), %v569_v1, %v568_v0  ;;  %v571_v5 = vld [vmem:[%s2377_s1 + $0x18] sm:$0xff] (!%p225_p3)  ;;  %p274_p4 = scmp.lt.s32.totalorder (!%p225_p3), %s1712_s25, 255  ;;  %v572_v7 = vld [vmem:[%s2377_s1 + $0x20] sm:$0xff] (!%p225_p3)  ;;  %v573_v8 = vld [vmem:[%s2377_s1 + $0x28] sm:$0xff] (!%p225_p3) }
   0x8   : > { %v1726_v6 = vpack.c.bf16 (!%p225_p3), %v571_v5, %v570_v2  ;;  %v1729_v9 = vpack.c.bf16 (!%p225_p3), %v573_v8, %v572_v7  ;;  %v574_v10 = vld [vmem:[%s2377_s1 + $0x30] sm:$0xff] (!%p225_p3)  ;;  %v575_v11 = vld [vmem:[%s2377_s1 + $0x38] sm:$0xff] (!%p225_p3)  ;;  %v576_v15 = vld [vmem:[%s2377_s1 + $0x40] sm:$0xff] (!%p225_p3) }
   0x9   : > { %1724 = vmatpush1.bf16.msra.mxu0 (!%p225_p3), %v1723_v4  ;;  %1786 = vmatpush1.bf16.msra.mxu1 (!%p225_p3), %v1723_v4  ;;  %v1732_v13 = vpack.c.bf16 (!%p225_p3), %v575_v11, %v574_v10  ;;  %v577_v16 = vld [vmem:[%s2377_s1 + $0x48] sm:$0xff] (!%p225_p3)  ;;  %v578_v18 = vld [vmem:[%s2377_s1 + $0x50] sm:$0xff] (!%p225_p3)  ;;  %v579_v19 = vld [vmem:[%s2377_s1 + $0x58] sm:$0xff] (!%p225_p3) }
   0xa   : > { %1725 = vmatprep.subr.bf16.mxu0 (!%p225_p3), %v1851_v3  ;;  %1771 = vmatprep.subr.bf16.mxu1 (!%p225_p3), %v1851_v3  ;;  %v1735_v17 = vpack.c.bf16 (!%p225_p3), %v577_v16, %v576_v15  ;;  %v1738_v20 = vpack.c.bf16 (!%p225_p3), %v579_v19, %v578_v18  ;;  %v580_v21 = vld [vmem:[%s2377_s1 + $0x60] sm:$0xff] (!%p225_p3)  ;;  %v581_v22 = vld [vmem:[%s2377_s1 + $0x68] sm:$0xff] (!%p225_p3)  ;;  %v582_v24 = vld [vmem:[%s2377_s1 + $0x70] sm:$0xff] (!%p225_p3) }
   0xb   : > { %v1741_v23 = vpack.c.bf16 (!%p225_p3), %v581_v22, %v580_v21  ;;  %v583_v25 = vld [vmem:[%s2377_s1 + $0x78] sm:$0xff] (!%p225_p3)  ;;  %v584_v27 = vld [vmem:[%s2377_s1 + $0x80] sm:$0xff] (!%p225_p3)  ;;  %v585_v28 = vld [vmem:[%s2377_s1 + $0x88] sm:$0xff] (!%p225_p3) }
   0xc   : > { %v1744_v26 = vpack.c.bf16 (!%p225_p3), %v583_v25, %v582_v24  ;;  %v1747_v29 = vpack.c.bf16 (!%p225_p3), %v585_v28, %v584_v27  ;;  %v586_v30 = vld [vmem:[%s2377_s1 + $0x90] sm:$0xff] (!%p225_p3)  ;;  %v587_v31 = vld [vmem:[%s2377_s1 + $0x98] sm:$0xff] (!%p225_p3)  ;;  %v588_v33 = vld [vmem:[%s2377_s1 + $0xa0] sm:$0xff] (!%p225_p3) }
   0xd   : > { %1727 = vmatpush1.bf16.msra.mxu0 (!%p225_p3), %v1726_v6  ;;  %1787 = vmatpush1.bf16.msra.mxu1 (!%p225_p3), %v1726_v6  ;;  %v1750_v32 = vpack.c.bf16 (!%p225_p3), %v587_v31, %v586_v30  ;;  %v589_v34 = vld [vmem:[%s2377_s1 + $0xa8] sm:$0xff] (!%p225_p3)  ;;  %v590_v36 = vld [vmem:[%s2377_s1 + $0xb0] sm:$0xff] (!%p225_p3)  ;;  %v591_v37 = vld [vmem:[%s2377_s1 + $0xb8] sm:$0xff] (!%p225_p3) }
   0xe   : > { %s2386_s25 = smov (!%p274_p4, %s1712_s25), 255  ;;  %1728 = vmatprep.subr.bf16.mxu0 %v1851_v3  ;;  %1772 = vmatprep.subr.bf16.mxu1 %v1851_v3  ;;  %v1753_v35 = vpack.c.bf16 %v589_v34, %v588_v33  ;;  %v1756_v38 = vpack.c.bf16 %v591_v37, %v590_v36  ;;  %v592_v39 = vld [vmem:[%s2377_s1 + $0xc0] sm:$0xff]  ;;  %v593_v40 = vld [vmem:[%s2377_s1 + $0xc8] sm:$0xff]  ;;  %v594_v42 = vld [vmem:[%s2377_s1 + $0xd0] sm:$0xff] }
   0xf   : > { %s1721_s6 = sshll.u32 %s2386_s25, 4  ;;  %v1759_v41 = vpack.c.bf16 %v593_v40, %v592_v39  ;;  %v595_v43 = vld [vmem:[%s2377_s1 + $0xd8] sm:$0xff]  ;;  %v596_v45 = vld [vmem:[%s2377_s1 + $0xe0] sm:$0xff]  ;;  %v597_v46 = vld [vmem:[%s2377_s1 + $0xe8] sm:$0xff] }
  0x10   : > { %s1923_s9 = scalar_lea.vmem %s2376_s0, %s1721_s6  ;;  %v1762_v44 = vpack.c.bf16 %v595_v43, %v594_v42  ;;  %v1765_v47 = vpack.c.bf16 %v597_v46, %v596_v45  ;;  %v598_v48 = vld [vmem:[%s2377_s1 + $0xf0] sm:$0xff]  ;;  %v599_v49 = vld [vmem:[%s2377_s1 + $0xf8] sm:$0xff] }
  0x11   : > { %v441_v12 = vld [vmem:[%s1923_s9 + $0x8] sm:$0xff]  ;;  %1730 = vmatpush1.bf16.msra.mxu0 %v1729_v9  ;;  %1788 = vmatpush1.bf16.msra.mxu1 %v1729_v9  ;;  %v1768_v50 = vpack.c.bf16 %v599_v49, %v598_v48  ;;  %v440_v51 = vld [vmem:[%s1923_s9] sm:$0xff]  ;;  %v443_v53 = vld [vmem:[%s1923_s9 + $0x18] sm:$0xff] }
  0x12   : > { %v505_v14 = vld [vmem:[%s1923_s9 + $0x208] sm:$0xff]  ;;  %1731 = vmatprep.subr.bf16.mxu0 %v1851_v3  ;;  %1773 = vmatprep.subr.bf16.mxu1 %v1851_v3  ;;  %v504_v52 = vld [vmem:[%s1923_s9 + $0x200] sm:$0xff]  ;;  %v507_v54 = vld [vmem:[%s1923_s9 + $0x218] sm:$0xff] }
  0x13   : > { %664 = vmatprep.mubr.f32.mxu0 %v441_v12  ;;  %824 = vmatprep.mubr.f32.mxu1 %v505_v14  ;;  %v442_v55 = vld [vmem:[%s1923_s9 + $0x10] sm:$0xff]  ;;  %v445_v57 = vld [vmem:[%s1923_s9 + $0x28] sm:$0xff]  ;;  %v444_v59 = vld [vmem:[%s1923_s9 + $0x20] sm:$0xff] }
  0x14   : > { %v506_v56 = vld [vmem:[%s1923_s9 + $0x210] sm:$0xff]  ;;  %v509_v58 = vld [vmem:[%s1923_s9 + $0x228] sm:$0xff]  ;;  %v508_v60 = vld [vmem:[%s1923_s9 + $0x220] sm:$0xff] }
  0x15   : > { %1733 = vmatpush1.bf16.msra.mxu0 %v1732_v13  ;;  %1789 = vmatpush1.bf16.msra.mxu1 %v1732_v13  ;;  %v447_v61 = vld [vmem:[%s1923_s9 + $0x38] sm:$0xff]  ;;  %v446_v63 = vld [vmem:[%s1923_s9 + $0x30] sm:$0xff]  ;;  %v449_v1 = vld [vmem:[%s1923_s9 + $0x48] sm:$0xff] }
  0x16   : > { %1734 = vmatprep.subr.bf16.mxu0 %v1851_v3  ;;  %1774 = vmatprep.subr.bf16.mxu1 %v1851_v3  ;;  %v511_v62 = vld [vmem:[%s1923_s9 + $0x238] sm:$0xff]  ;;  %v510_v0 = vld [vmem:[%s1923_s9 + $0x230] sm:$0xff]  ;;  %v513_v2 = vld [vmem:[%s1923_s9 + $0x248] sm:$0xff] }
  0x17   : > { %v512_v4 = vld [vmem:[%s1923_s9 + $0x240] sm:$0xff]  ;;  %v451_v5 = vld [vmem:[%s1923_s9 + $0x58] sm:$0xff]  ;;  %v450_v7 = vld [vmem:[%s1923_s9 + $0x50] sm:$0xff] }
  0x18   : > { %v515_v6 = vld [vmem:[%s1923_s9 + $0x258] sm:$0xff]  ;;  %v514_v8 = vld [vmem:[%s1923_s9 + $0x250] sm:$0xff]  ;;  %v453_v9 = vld [vmem:[%s1923_s9 + $0x68] sm:$0xff] }
  0x19   : > { %1736 = vmatpush1.bf16.msra.mxu0 %v1735_v17  ;;  %1790 = vmatpush1.bf16.msra.mxu1 %v1735_v17  ;;  %v517_v10 = vld [vmem:[%s1923_s9 + $0x268] sm:$0xff]  ;;  %v452_v11 = vld [vmem:[%s1923_s9 + $0x60] sm:$0xff]  ;;  %v455_v13 = vld [vmem:[%s1923_s9 + $0x78] sm:$0xff] }
  0x1a   : > { %1737 = vmatprep.subr.bf16.mxu0 %v1851_v3  ;;  %1775 = vmatprep.subr.bf16.mxu1 %v1851_v3  ;;  %v516_v12 = vld [vmem:[%s1923_s9 + $0x260] sm:$0xff]  ;;  %v519_v14 = vld [vmem:[%s1923_s9 + $0x278] sm:$0xff]  ;;  %v454_v15 = vld [vmem:[%s1923_s9 + $0x70] sm:$0xff] }
  0x1b   : > { %v518_v16 = vld [vmem:[%s1923_s9 + $0x270] sm:$0xff]  ;;  %v457_v17 = vld [vmem:[%s1923_s9 + $0x88] sm:$0xff]  ;;  %v456_v19 = vld [vmem:[%s1923_s9 + $0x80] sm:$0xff] }
  0x1c   : > { %v521_v18 = vld [vmem:[%s1923_s9 + $0x288] sm:$0xff]  ;;  %v459_v21 = vld [vmem:[%s1923_s9 + $0x98] sm:$0xff]  ;;  %v522_v24 = vld [vmem:[%s1923_s9 + $0x290] sm:$0xff] }
  0x1d   : > { %1739 = vmatpush1.bf16.msra.mxu0 %v1738_v20  ;;  %1791 = vmatpush1.bf16.msra.mxu1 %v1738_v20  ;;  %v520_v20 = vld [vmem:[%s1923_s9 + $0x280] sm:$0xff]  ;;  %v523_v22 = vld [vmem:[%s1923_s9 + $0x298] sm:$0xff]  ;;  %v461_v25 = vld [vmem:[%s1923_s9 + $0xa8] sm:$0xff] }
  0x1e   : > { %1740 = vmatprep.subr.bf16.mxu0 %v1851_v3  ;;  %1776 = vmatprep.subr.bf16.mxu1 %v1851_v3  ;;  %v460_v27 = vld [vmem:[%s1923_s9 + $0xa0] sm:$0xff]  ;;  %v527_v30 = vld [vmem:[%s1923_s9 + $0x2b8] sm:$0xff]  ;;  %v462_v31 = vld [vmem:[%s1923_s9 + $0xb0] sm:$0xff] }
  0x1f   : > { %v524_v28 = vld [vmem:[%s1923_s9 + $0x2a0] sm:$0xff]  ;;  %v465_v33 = vld [vmem:[%s1923_s9 + $0xc8] sm:$0xff]  ;;  %v467_v37 = vld [vmem:[%s1923_s9 + $0xd8] sm:$0xff] }
  0x20   : > { %v529_v34 = vld [vmem:[%s1923_s9 + $0x2c8] sm:$0xff]  ;;  %v528_v36 = vld [vmem:[%s1923_s9 + $0x2c0] sm:$0xff]  ;;  %v466_v39 = vld [vmem:[%s1923_s9 + $0xd0] sm:$0xff] }
  0x21   : > { %1742 = vmatpush1.bf16.msra.mxu0 %v1741_v23  ;;  %1792 = vmatpush1.bf16.msra.mxu1 %v1741_v23  ;;  %v458_v23 = vld [vmem:[%s1923_s9 + $0x90] sm:$0xff]  ;;  %v533_v42 = vld [vmem:[%s1923_s9 + $0x2e8] sm:$0xff]  ;;  %v468_v43 = vld [vmem:[%s1923_s9 + $0xe0] sm:$0xff] }
  0x22   : > { %1743 = vmatprep.subr.bf16.mxu0 %v1851_v3  ;;  %1777 = vmatprep.subr.bf16.mxu1 %v1851_v3  ;;  %v530_v40 = vld [vmem:[%s1923_s9 + $0x2d0] sm:$0xff]  ;;  %v471_v45 = vld [vmem:[%s1923_s9 + $0xf8] sm:$0xff]  ;;  %v473_v49 = vld [vmem:[%s1923_s9 + $0x108] sm:$0xff] }
  0x23   : > { %v535_v46 = vld [vmem:[%s1923_s9 + $0x2f8] sm:$0xff]  ;;  %v534_v48 = vld [vmem:[%s1923_s9 + $0x2f0] sm:$0xff] }
  0x25   : > { %1745 = vmatpush1.bf16.msra.mxu0 %v1744_v26  ;;  %1793 = vmatpush1.bf16.msra.mxu1 %v1744_v26  ;;  %v525_v26 = vld [vmem:[%s1923_s9 + $0x2a8] sm:$0xff] }
  0x26   : > { %1746 = vmatprep.subr.bf16.mxu0 %v1851_v3  ;;  %1778 = vmatprep.subr.bf16.mxu1 %v1851_v3 }
  0x29   : > { %1748 = vmatpush1.bf16.msra.mxu0 %v1747_v29  ;;  %1794 = vmatpush1.bf16.msra.mxu1 %v1747_v29  ;;  %v463_v29 = vld [vmem:[%s1923_s9 + $0xb8] sm:$0xff] }
  0x2a   : > { %1749 = vmatprep.subr.bf16.mxu0 %v1851_v3  ;;  %1779 = vmatprep.subr.bf16.mxu1 %v1851_v3 }
  0x2d   : > { %1751 = vmatpush1.bf16.msra.mxu0 %v1750_v32  ;;  %1795 = vmatpush1.bf16.msra.mxu1 %v1750_v32  ;;  %v526_v32 = vld [vmem:[%s1923_s9 + $0x2b0] sm:$0xff] }
  0x2e   : > { %1752 = vmatprep.subr.bf16.mxu0 %v1851_v3  ;;  %1780 = vmatprep.subr.bf16.mxu1 %v1851_v3 }
  0x31   : > { %1754 = vmatpush1.bf16.msra.mxu0 %v1753_v35  ;;  %1796 = vmatpush1.bf16.msra.mxu1 %v1753_v35  ;;  %v464_v35 = vld [vmem:[%s1923_s9 + $0xc0] sm:$0xff] }
  0x32   : > { %1755 = vmatprep.subr.bf16.mxu0 %v1851_v3  ;;  %1781 = vmatprep.subr.bf16.mxu1 %v1851_v3 }
  0x35   : > { %1757 = vmatpush1.bf16.msra.mxu0 %v1756_v38  ;;  %1797 = vmatpush1.bf16.msra.mxu1 %v1756_v38  ;;  %v531_v38 = vld [vmem:[%s1923_s9 + $0x2d8] sm:$0xff] }
  0x36   : > { %1758 = vmatprep.subr.bf16.mxu0 %v1851_v3  ;;  %1782 = vmatprep.subr.bf16.mxu1 %v1851_v3 }
  0x39   : > { %1760 = vmatpush1.bf16.msra.mxu0 %v1759_v41  ;;  %1798 = vmatpush1.bf16.msra.mxu1 %v1759_v41  ;;  %v469_v41 = vld [vmem:[%s1923_s9 + $0xe8] sm:$0xff] }
  0x3a   : > { %1761 = vmatprep.subr.bf16.mxu0 %v1851_v3  ;;  %1783 = vmatprep.subr.bf16.mxu1 %v1851_v3 }
  0x3d   : > { %1763 = vmatpush1.bf16.msra.mxu0 %v1762_v44  ;;  %1799 = vmatpush1.bf16.msra.mxu1 %v1762_v44  ;;  %v532_v44 = vld [vmem:[%s1923_s9 + $0x2e0] sm:$0xff] }
  0x3e   : > { %1764 = vmatprep.subr.bf16.mxu0 %v1851_v3  ;;  %1784 = vmatprep.subr.bf16.mxu1 %v1851_v3 }
  0x41   : > { %1766 = vmatpush1.bf16.msra.mxu0 %v1765_v47  ;;  %1800 = vmatpush1.bf16.msra.mxu1 %v1765_v47  ;;  %v470_v47 = vld [vmem:[%s1923_s9 + $0xf0] sm:$0xff] }
  0x42   : > { %1767 = vmatprep.subr.bf16.mxu0 %v1851_v3  ;;  %1785 = vmatprep.subr.bf16.mxu1 %v1851_v3  ;;  %v448_v3 = vld [vmem:[%s1923_s9 + $0x40] sm:$0xff] }
  0x45   : > { %1769 = vmatpush1.bf16.msra.mxu0 %v1768_v50  ;;  %1801 = vmatpush1.bf16.msra.mxu1 %v1768_v50  ;;  %v537_v50 = vld [vmem:[%s1923_s9 + $0x308] sm:$0xff] }
  0x48   : > { %665 = vmatmul.mubr.f32.vlgmr.msra.gmra.mrb[0].mxu0 %v440_v51  ;;  %825 = vmatmul.mubr.f32.vlgmr.msra.gmra.mrb[0].mxu1 %v504_v52  ;;  %v472_v51 = vld [vmem:[%s1923_s9 + $0x100] sm:$0xff] }
  0x49   : > { %669 = vmatprep.mubr.f32.mxu0 %v443_v53  ;;  %829 = vmatprep.mubr.f32.mxu1 %v507_v54  ;;  %v536_v52 = vld [vmem:[%s1923_s9 + $0x300] sm:$0xff]  ;;  %v475_v53 = vld [vmem:[%s1923_s9 + $0x118] sm:$0xff] }
  0x4a   : > { %v539_v54 = vld [vmem:[%s1923_s9 + $0x318] sm:$0xff] }
  0x4c   : > { %670 = vmatmul.mubr.f32.gmra.mrb[2].mxu0 %v442_v55  ;;  %830 = vmatmul.mubr.f32.gmra.mrb[2].mxu1 %v506_v56  ;;  %v474_v55 = vld [vmem:[%s1923_s9 + $0x110] sm:$0xff] }
  0x4d   : > { %674 = vmatprep.mubr.f32.mxu0 %v445_v57  ;;  %834 = vmatprep.mubr.f32.mxu1 %v509_v58  ;;  %v538_v56 = vld [vmem:[%s1923_s9 + $0x310] sm:$0xff]  ;;  %v477_v57 = vld [vmem:[%s1923_s9 + $0x128] sm:$0xff] }
  0x4e   : > { %v541_v58 = vld [vmem:[%s1923_s9 + $0x328] sm:$0xff] }
  0x50   : > { %675 = vmatmul.mubr.f32.gmra.mrb[4].mxu0 %v444_v59  ;;  %835 = vmatmul.mubr.f32.gmra.mrb[4].mxu1 %v508_v60  ;;  %v476_v59 = vld [vmem:[%s1923_s9 + $0x120] sm:$0xff] }
  0x51   : > { %679 = vmatprep.mubr.f32.mxu0 %v447_v61  ;;  %839 = vmatprep.mubr.f32.mxu1 %v511_v62  ;;  %v540_v60 = vld [vmem:[%s1923_s9 + $0x320] sm:$0xff]  ;;  %v479_v61 = vld [vmem:[%s1923_s9 + $0x138] sm:$0xff] }
  0x52   : > { %v543_v62 = vld [vmem:[%s1923_s9 + $0x338] sm:$0xff] }
  0x54   : > { %680 = vmatmul.mubr.f32.gmra.mrb[6].mxu0 %v446_v63  ;;  %840 = vmatmul.mubr.f32.gmra.mrb[6].mxu1 %v510_v0  ;;  %v478_v63 = vld [vmem:[%s1923_s9 + $0x130] sm:$0xff] }
  0x55   : > { %684 = vmatprep.mubr.f32.mxu0 %v449_v1  ;;  %844 = vmatprep.mubr.f32.mxu1 %v513_v2  ;;  %v542_v0 = vld [vmem:[%s1923_s9 + $0x330] sm:$0xff]  ;;  %v481_v1 = vld [vmem:[%s1923_s9 + $0x148] sm:$0xff] }
  0x56   : > { %v545_v2 = vld [vmem:[%s1923_s9 + $0x348] sm:$0xff] }
  0x58   : > { %685 = vmatmul.mubr.f32.gmra.mrb[8].mxu0 %v448_v3  ;;  %845 = vmatmul.mubr.f32.gmra.mrb[8].mxu1 %v512_v4  ;;  %v480_v3 = vld [vmem:[%s1923_s9 + $0x140] sm:$0xff] }
  0x59   : > { %689 = vmatprep.mubr.f32.mxu0 %v451_v5  ;;  %849 = vmatprep.mubr.f32.mxu1 %v515_v6  ;;  %v544_v4 = vld [vmem:[%s1923_s9 + $0x340] sm:$0xff]  ;;  %v483_v5 = vld [vmem:[%s1923_s9 + $0x158] sm:$0xff] }
  0x5a   : > { %v547_v6 = vld [vmem:[%s1923_s9 + $0x358] sm:$0xff] }
  0x5c   : > { %690 = vmatmul.mubr.f32.gmra.mrb[10].mxu0 %v450_v7  ;;  %850 = vmatmul.mubr.f32.gmra.mrb[10].mxu1 %v514_v8  ;;  %v482_v7 = vld [vmem:[%s1923_s9 + $0x150] sm:$0xff] }
  0x5d   : > { %694 = vmatprep.mubr.f32.mxu0 %v453_v9  ;;  %854 = vmatprep.mubr.f32.mxu1 %v517_v10  ;;  %v546_v8 = vld [vmem:[%s1923_s9 + $0x350] sm:$0xff]  ;;  %v485_v9 = vld [vmem:[%s1923_s9 + $0x168] sm:$0xff] }
  0x5e   : > { %v549_v10 = vld [vmem:[%s1923_s9 + $0x368] sm:$0xff] }
  0x60   : > { %695 = vmatmul.mubr.f32.gmra.mrb[12].mxu0 %v452_v11  ;;  %855 = vmatmul.mubr.f32.gmra.mrb[12].mxu1 %v516_v12  ;;  %v484_v11 = vld [vmem:[%s1923_s9 + $0x160] sm:$0xff] }
  0x61   : > { %699 = vmatprep.mubr.f32.mxu0 %v455_v13  ;;  %859 = vmatprep.mubr.f32.mxu1 %v519_v14  ;;  %v548_v12 = vld [vmem:[%s1923_s9 + $0x360] sm:$0xff]  ;;  %v487_v13 = vld [vmem:[%s1923_s9 + $0x178] sm:$0xff] }
  0x62   : > { %v551_v14 = vld [vmem:[%s1923_s9 + $0x378] sm:$0xff] }
  0x64   : > { %700 = vmatmul.mubr.f32.gmra.mrb[14].mxu0 %v454_v15  ;;  %860 = vmatmul.mubr.f32.gmra.mrb[14].mxu1 %v518_v16  ;;  %v486_v15 = vld [vmem:[%s1923_s9 + $0x170] sm:$0xff] }
  0x65   : > { %704 = vmatprep.mubr.f32.mxu0 %v457_v17  ;;  %864 = vmatprep.mubr.f32.mxu1 %v521_v18  ;;  %v550_v16 = vld [vmem:[%s1923_s9 + $0x370] sm:$0xff]  ;;  %v489_v17 = vld [vmem:[%s1923_s9 + $0x188] sm:$0xff] }
  0x66   : > { %v553_v18 = vld [vmem:[%s1923_s9 + $0x388] sm:$0xff] }
  0x68   : > { %705 = vmatmul.mubr.f32.gmra.mrb[16].mxu0 %v456_v19  ;;  %865 = vmatmul.mubr.f32.gmra.mrb[16].mxu1 %v520_v20  ;;  %v488_v19 = vld [vmem:[%s1923_s9 + $0x180] sm:$0xff] }
  0x69   : > { %709 = vmatprep.mubr.f32.mxu0 %v459_v21  ;;  %869 = vmatprep.mubr.f32.mxu1 %v523_v22  ;;  %v552_v20 = vld [vmem:[%s1923_s9 + $0x380] sm:$0xff]  ;;  %v491_v21 = vld [vmem:[%s1923_s9 + $0x198] sm:$0xff] }
  0x6a   : > { %v555_v22 = vld [vmem:[%s1923_s9 + $0x398] sm:$0xff] }
  0x6c   : > { %710 = vmatmul.mubr.f32.gmra.mrb[18].mxu0 %v458_v23  ;;  %870 = vmatmul.mubr.f32.gmra.mrb[18].mxu1 %v522_v24  ;;  %v490_v23 = vld [vmem:[%s1923_s9 + $0x190] sm:$0xff] }
  0x6d   : > { %714 = vmatprep.mubr.f32.mxu0 %v461_v25  ;;  %874 = vmatprep.mubr.f32.mxu1 %v525_v26  ;;  %v554_v24 = vld [vmem:[%s1923_s9 + $0x390] sm:$0xff]  ;;  %v493_v25 = vld [vmem:[%s1923_s9 + $0x1a8] sm:$0xff] }
  0x6e   : > { %v557_v26 = vld [vmem:[%s1923_s9 + $0x3a8] sm:$0xff] }
  0x70   : > { %715 = vmatmul.mubr.f32.gmra.mrb[20].mxu0 %v460_v27  ;;  %875 = vmatmul.mubr.f32.gmra.mrb[20].mxu1 %v524_v28  ;;  %v492_v27 = vld [vmem:[%s1923_s9 + $0x1a0] sm:$0xff] }
  0x71   : > { %719 = vmatprep.mubr.f32.mxu0 %v463_v29  ;;  %879 = vmatprep.mubr.f32.mxu1 %v527_v30  ;;  %v556_v28 = vld [vmem:[%s1923_s9 + $0x3a0] sm:$0xff]  ;;  %v495_v29 = vld [vmem:[%s1923_s9 + $0x1b8] sm:$0xff] }
  0x72   : > { %v559_v30 = vld [vmem:[%s1923_s9 + $0x3b8] sm:$0xff] }
  0x74   : > { %720 = vmatmul.mubr.f32.gmra.mrb[22].mxu0 %v462_v31  ;;  %880 = vmatmul.mubr.f32.gmra.mrb[22].mxu1 %v526_v32  ;;  %v494_v31 = vld [vmem:[%s1923_s9 + $0x1b0] sm:$0xff] }
  0x75   : > { %724 = vmatprep.mubr.f32.mxu0 %v465_v33  ;;  %884 = vmatprep.mubr.f32.mxu1 %v529_v34  ;;  %v558_v32 = vld [vmem:[%s1923_s9 + $0x3b0] sm:$0xff]  ;;  %v497_v33 = vld [vmem:[%s1923_s9 + $0x1c8] sm:$0xff] }
  0x76   : > { %v561_v34 = vld [vmem:[%s1923_s9 + $0x3c8] sm:$0xff] }
  0x78   : > { %725 = vmatmul.mubr.f32.gmra.mrb[24].mxu0 %v464_v35  ;;  %885 = vmatmul.mubr.f32.gmra.mrb[24].mxu1 %v528_v36  ;;  %v496_v35 = vld [vmem:[%s1923_s9 + $0x1c0] sm:$0xff] }
  0x79   : > { %729 = vmatprep.mubr.f32.mxu0 %v467_v37  ;;  %889 = vmatprep.mubr.f32.mxu1 %v531_v38  ;;  %v560_v36 = vld [vmem:[%s1923_s9 + $0x3c0] sm:$0xff]  ;;  %v499_v37 = vld [vmem:[%s1923_s9 + $0x1d8] sm:$0xff] }
  0x7a   : > { %v563_v38 = vld [vmem:[%s1923_s9 + $0x3d8] sm:$0xff] }
  0x7c   : > { %730 = vmatmul.mubr.f32.gmra.mrb[26].mxu0 %v466_v39  ;;  %890 = vmatmul.mubr.f32.gmra.mrb[26].mxu1 %v530_v40  ;;  %v498_v39 = vld [vmem:[%s1923_s9 + $0x1d0] sm:$0xff] }
  0x7d   : > { %734 = vmatprep.mubr.f32.mxu0 %v469_v41  ;;  %894 = vmatprep.mubr.f32.mxu1 %v533_v42  ;;  %v562_v40 = vld [vmem:[%s1923_s9 + $0x3d0] sm:$0xff]  ;;  %v501_v41 = vld [vmem:[%s1923_s9 + $0x1e8] sm:$0xff] }
  0x7e   : > { %v565_v42 = vld [vmem:[%s1923_s9 + $0x3e8] sm:$0xff] }
  0x80   : > { %735 = vmatmul.mubr.f32.gmra.mrb[28].mxu0 %v468_v43  ;;  %895 = vmatmul.mubr.f32.gmra.mrb[28].mxu1 %v532_v44  ;;  %v500_v43 = vld [vmem:[%s1923_s9 + $0x1e0] sm:$0xff] }
  0x81   : > { %739 = vmatprep.mubr.f32.mxu0 %v471_v45  ;;  %899 = vmatprep.mubr.f32.mxu1 %v535_v46  ;;  %v564_v44 = vld [vmem:[%s1923_s9 + $0x3e0] sm:$0xff]  ;;  %v503_v45 = vld [vmem:[%s1923_s9 + $0x1f8] sm:$0xff] }
  0x82   : > { %v567_v46 = vld [vmem:[%s1923_s9 + $0x3f8] sm:$0xff] }
  0x84   : > { %740 = vmatmul.mubr.f32.gmra.mrb[30].mxu0 %v470_v47  ;;  %900 = vmatmul.mubr.f32.gmra.mrb[30].mxu1 %v534_v48  ;;  %v502_v47 = vld [vmem:[%s1923_s9 + $0x1f0] sm:$0xff] }
  0x85   : > { %744 = vmatprep.mubr.f32.mxu0 %v473_v49  ;;  %904 = vmatprep.mubr.f32.mxu1 %v537_v50  ;;  %v566_v48 = vld [vmem:[%s1923_s9 + $0x3f0] sm:$0xff]  ;;  %v2162_v49 = vld [vmem:[%s2378_s2] ss:$0 sm:$0xff]  ;;  %s1716_s9 = sshll.u32 %s2386_s25, 3 }
  0x86   : > { %s2177_s30 = scalar_lea.vmem %s2380_s4, %s1716_s9 }
  0x88   : > { %745 = vmatmul.mubr.f32.gmra.mrb[32].mxu0 %v472_v51  ;;  %905 = vmatmul.mubr.f32.gmra.mrb[32].mxu1 %v536_v52  ;;  %v2167_v51 = vld [vmem:[%s2379_s3] ss:$0 sm:$0xff] }
  0x89   : > { %749 = vmatprep.mubr.f32.mxu0 %v475_v53  ;;  %909 = vmatprep.mubr.f32.mxu1 %v539_v54 }
  0x8c   : > { %750 = vmatmul.mubr.f32.gmra.mrb[34].mxu0 %v474_v55  ;;  %910 = vmatmul.mubr.f32.gmra.mrb[34].mxu1 %v538_v56 }
  0x8d   : > { %754 = vmatprep.mubr.f32.mxu0 %v477_v57  ;;  %914 = vmatprep.mubr.f32.mxu1 %v541_v58 }
  0x90   : > { %755 = vmatmul.mubr.f32.gmra.mrb[36].mxu0 %v476_v59  ;;  %915 = vmatmul.mubr.f32.gmra.mrb[36].mxu1 %v540_v60 }
  0x91   : > { %759 = vmatprep.mubr.f32.mxu0 %v479_v61  ;;  %919 = vmatprep.mubr.f32.mxu1 %v543_v62 }
  0x94   : > { %760 = vmatmul.mubr.f32.gmra.mrb[38].mxu0 %v478_v63  ;;  %920 = vmatmul.mubr.f32.gmra.mrb[38].mxu1 %v542_v0 }
  0x95   : > { %764 = vmatprep.mubr.f32.mxu0 %v481_v1  ;;  %924 = vmatprep.mubr.f32.mxu1 %v545_v2 }
  0x98   : > { %765 = vmatmul.mubr.f32.gmra.mrb[40].mxu0 %v480_v3  ;;  %925 = vmatmul.mubr.f32.gmra.mrb[40].mxu1 %v544_v4 }
  0x99   : > { %769 = vmatprep.mubr.f32.mxu0 %v483_v5  ;;  %929 = vmatprep.mubr.f32.mxu1 %v547_v6 }
  0x9c   : > { %770 = vmatmul.mubr.f32.gmra.mrb[42].mxu0 %v482_v7  ;;  %930 = vmatmul.mubr.f32.gmra.mrb[42].mxu1 %v546_v8 }
  0x9d   : > { %774 = vmatprep.mubr.f32.mxu0 %v485_v9  ;;  %934 = vmatprep.mubr.f32.mxu1 %v549_v10 }
  0xa0   : > { %775 = vmatmul.mubr.f32.gmra.mrb[44].mxu0 %v484_v11  ;;  %935 = vmatmul.mubr.f32.gmra.mrb[44].mxu1 %v548_v12 }
  0xa1   : > { %779 = vmatprep.mubr.f32.mxu0 %v487_v13  ;;  %939 = vmatprep.mubr.f32.mxu1 %v551_v14 }
  0xa4   : > { %780 = vmatmul.mubr.f32.gmra.mrb[46].mxu0 %v486_v15  ;;  %940 = vmatmul.mubr.f32.gmra.mrb[46].mxu1 %v550_v16 }
  0xa5   : > { %784 = vmatprep.mubr.f32.mxu0 %v489_v17  ;;  %944 = vmatprep.mubr.f32.mxu1 %v553_v18 }
  0xa8   : > { %785 = vmatmul.mubr.f32.gmra.mrb[48].mxu0 %v488_v19  ;;  %945 = vmatmul.mubr.f32.gmra.mrb[48].mxu1 %v552_v20 }
  0xa9   : > { %789 = vmatprep.mubr.f32.mxu0 %v491_v21  ;;  %949 = vmatprep.mubr.f32.mxu1 %v555_v22 }
  0xac   : > { %790 = vmatmul.mubr.f32.gmra.mrb[50].mxu0 %v490_v23  ;;  %950 = vmatmul.mubr.f32.gmra.mrb[50].mxu1 %v554_v24 }
  0xad   : > { %794 = vmatprep.mubr.f32.mxu0 %v493_v25  ;;  %954 = vmatprep.mubr.f32.mxu1 %v557_v26 }
  0xb0   : > { %795 = vmatmul.mubr.f32.gmra.mrb[52].mxu0 %v492_v27  ;;  %955 = vmatmul.mubr.f32.gmra.mrb[52].mxu1 %v556_v28 }
  0xb1   : > { %799 = vmatprep.mubr.f32.mxu0 %v495_v29  ;;  %959 = vmatprep.mubr.f32.mxu1 %v559_v30 }
  0xb4   : > { %800 = vmatmul.mubr.f32.gmra.mrb[54].mxu0 %v494_v31  ;;  %960 = vmatmul.mubr.f32.gmra.mrb[54].mxu1 %v558_v32 }
  0xb5   : > { %804 = vmatprep.mubr.f32.mxu0 %v497_v33  ;;  %964 = vmatprep.mubr.f32.mxu1 %v561_v34 }
  0xb8   : > { %805 = vmatmul.mubr.f32.gmra.mrb[56].mxu0 %v496_v35  ;;  %965 = vmatmul.mubr.f32.gmra.mrb[56].mxu1 %v560_v36 }
  0xb9   : > { %809 = vmatprep.mubr.f32.mxu0 %v499_v37  ;;  %969 = vmatprep.mubr.f32.mxu1 %v563_v38 }
  0xbc   : > { %810 = vmatmul.mubr.f32.gmra.mrb[58].mxu0 %v498_v39  ;;  %970 = vmatmul.mubr.f32.gmra.mrb[58].mxu1 %v562_v40 }
  0xbd   : > { %814 = vmatprep.mubr.f32.mxu0 %v501_v41  ;;  %974 = vmatprep.mubr.f32.mxu1 %v565_v42 }
  0xc0   : > { %815 = vmatmul.mubr.f32.gmra.mrb[60].mxu0 %v500_v43  ;;  %975 = vmatmul.mubr.f32.gmra.mrb[60].mxu1 %v564_v44 }
  0xc1   : > { %819 = vmatprep.mubr.f32.mxu0 %v503_v45  ;;  %979 = vmatprep.mubr.f32.mxu1 %v567_v46 }
  0xc4   : > { %820 = vmatmul.mubr.f32.gmra.mrb[62].mxu0 %v502_v47  ;;  %980 = vmatmul.mubr.f32.gmra.mrb[62].mxu1 %v566_v48 }
 0x11b   : > { %v666_v50 = vpop.f32.mrb[0].mxu0  ;;  %v826_v52 = vpop.f32.mrb[0].mxu1 }
 0x11c   : > { %v1187_v53 = vmul.f32 %v2162_v49, %v666_v50  ;;  %v1219_v54 = vmul.f32 %v2162_v49, %v826_v52  ;;  %v668_v55 = vpop.f32.mrb[1].mxu0  ;;  %v828_v56 = vpop.f32.mrb[1].mxu1 }
 0x11e   : > { %v1258_v57 = vadd.f32 %v2167_v51, %v1187_v53  ;;  %v1290_v58 = vadd.f32 %v2167_v51, %v1219_v54 }
 0x11f   : > { %v671_v59 = vpop.f32.mrb[2].mxu0  ;;  %v831_v60 = vpop.f32.mrb[2].mxu1 }
 0x120   : > { %vm1322_vm0 = vcmp.ge.f32.partialorder %v1258_v57, 0.0  ;;  %v1386_v61 = vmul.f32 0.2, %v1258_v57  ;;  %vm1354_vm1 = vcmp.ge.f32.partialorder %v1290_v58, 0.0  ;;  %v1418_v62 = vmul.f32 0.2, %v1290_v58 }
 0x121   : > { %v1188_v63 = vmul.f32 %v2162_v49, %v671_v59  ;;  %v1220_v0 = vmul.f32 %v2162_v49, %v831_v60  ;;  %v673_v1 = vpop.f32.mrb[3].mxu0  ;;  %v833_v2 = vpop.f32.mrb[3].mxu1 }
 0x122   : > { %v1450_v3 = vsel %vm1322_vm0, %v1258_v57, %v1386_v61  ;;  %v1482_v4 = vsel %vm1354_vm1, %v1290_v58, %v1418_v62 }
 0x123   : > { %1514 = vst [vmem:[%s2177_s30] sm:$0xff] %v1450_v3  ;;  %1546 = vst [vmem:[%s2177_s30 + $0x100] sm:$0xff] %v1482_v4  ;;  %v1259_v5 = vadd.f32 %v2167_v51, %v1188_v63  ;;  %v1291_v6 = vadd.f32 %v2167_v51, %v1220_v0  ;;  %v676_v7 = vpop.f32.mrb[4].mxu0  ;;  %v836_v8 = vpop.f32.mrb[4].mxu1 }
 0x124   : > { %v1189_v9 = vmul.f32 %v2162_v49, %v676_v7  ;;  %v1221_v10 = vmul.f32 %v2162_v49, %v836_v8  ;;  %v678_v11 = vpop.f32.mrb[5].mxu0  ;;  %v838_v12 = vpop.f32.mrb[5].mxu1 }
 0x125   : > { %vm1323_vm2 = vcmp.ge.f32.partialorder %v1259_v5, 0.0  ;;  %v1387_v13 = vmul.f32 0.2, %v1259_v5  ;;  %vm1355_vm3 = vcmp.ge.f32.partialorder %v1291_v6, 0.0  ;;  %v1419_v14 = vmul.f32 0.2, %v1291_v6 }
 0x126   : > { %v1260_v15 = vadd.f32 %v2167_v51, %v1189_v9  ;;  %v1292_v16 = vadd.f32 %v2167_v51, %v1221_v10 }
 0x127   : > { %v1451_v17 = vsel %vm1323_vm2, %v1259_v5, %v1387_v13  ;;  %v1483_v18 = vsel %vm1355_vm3, %v1291_v6, %v1419_v14  ;;  %v681_v19 = vpop.f32.mrb[6].mxu0  ;;  %v841_v20 = vpop.f32.mrb[6].mxu1 }
 0x128   : > { %1515 = vst [vmem:[%s2177_s30 + $0x8] sm:$0xff] %v1451_v17  ;;  %1547 = vst [vmem:[%s2177_s30 + $0x108] sm:$0xff] %v1483_v18  ;;  %vm1324_vm4 = vcmp.ge.f32.partialorder %v1260_v15, 0.0  ;;  %v1388_v21 = vmul.f32 0.2, %v1260_v15  ;;  %vm1356_vm5 = vcmp.ge.f32.partialorder %v1292_v16, 0.0  ;;  %v1190_v23 = vmul.f32 %v2162_v49, %v681_v19 }
 0x129   : > { %v1420_v22 = vmul.f32 0.2, %v1292_v16  ;;  %v1222_v24 = vmul.f32 %v2162_v49, %v841_v20  ;;  %v683_v25 = vpop.f32.mrb[7].mxu0  ;;  %v843_v26 = vpop.f32.mrb[7].mxu1 }
 0x12a   : > { %v1452_v27 = vsel %vm1324_vm4, %v1260_v15, %v1388_v21  ;;  %v1261_v29 = vadd.f32 %v2167_v51, %v1190_v23 }
 0x12b   : > { %v1484_v28 = vsel %vm1356_vm5, %v1292_v16, %v1420_v22  ;;  %1516 = vst [vmem:[%s2177_s30 + $0x10] sm:$0xff] %v1452_v27  ;;  %v1293_v30 = vadd.f32 %v2167_v51, %v1222_v24  ;;  %v686_v31 = vpop.f32.mrb[8].mxu0  ;;  %v846_v32 = vpop.f32.mrb[8].mxu1 }
 0x12c   : > { %1548 = vst [vmem:[%s2177_s30 + $0x110] sm:$0xff] %v1484_v28  ;;  %v1191_v33 = vmul.f32 %v2162_v49, %v686_v31  ;;  %v1223_v34 = vmul.f32 %v2162_v49, %v846_v32  ;;  %v688_v35 = vpop.f32.mrb[9].mxu0  ;;  %v848_v36 = vpop.f32.mrb[9].mxu1  ;;  %vm1325_vm6 = vcmp.ge.f32.partialorder %v1261_v29, 0.0  ;;  %v1389_v37 = vmul.f32 0.2, %v1261_v29 }
 0x12d   : > { %vm1357_vm7 = vcmp.ge.f32.partialorder %v1293_v30, 0.0  ;;  %v1421_v38 = vmul.f32 0.2, %v1293_v30 }
 0x12e   : > { %v1262_v39 = vadd.f32 %v2167_v51, %v1191_v33  ;;  %v1294_v40 = vadd.f32 %v2167_v51, %v1223_v34  ;;  %v1453_v41 = vsel %vm1325_vm6, %v1261_v29, %v1389_v37 }
 0x12f   : > { %v1485_v42 = vsel %vm1357_vm7, %v1293_v30, %v1421_v38  ;;  %v691_v43 = vpop.f32.mrb[10].mxu0  ;;  %v851_v44 = vpop.f32.mrb[10].mxu1  ;;  %1517 = vst [vmem:[%s2177_s30 + $0x18] sm:$0xff] %v1453_v41 }
 0x130   : > { %1549 = vst [vmem:[%s2177_s30 + $0x118] sm:$0xff] %v1485_v42  ;;  %vm1326_vm8 = vcmp.ge.f32.partialorder %v1262_v39, 0.0  ;;  %v1390_v45 = vmul.f32 0.2, %v1262_v39  ;;  %vm1358_vm9 = vcmp.ge.f32.partialorder %v1294_v40, 0.0  ;;  %v1192_v47 = vmul.f32 %v2162_v49, %v691_v43  ;;  %v693_v50 = vpop.f32.mrb[11].mxu0 }
 0x131   : > { %v1422_v46 = vmul.f32 0.2, %v1294_v40  ;;  %v1224_v48 = vmul.f32 %v2162_v49, %v851_v44  ;;  %v853_v52 = vpop.f32.mrb[11].mxu1 }
 0x132   : > { %v1454_v53 = vsel %vm1326_vm8, %v1262_v39, %v1390_v45  ;;  %v1263_v55 = vadd.f32 %v2167_v51, %v1192_v47 }
 0x133   : > { %v1486_v54 = vsel %vm1358_vm9, %v1294_v40, %v1422_v46  ;;  %1518 = vst [vmem:[%s2177_s30 + $0x20] sm:$0xff] %v1454_v53  ;;  %v1295_v56 = vadd.f32 %v2167_v51, %v1224_v48  ;;  %v696_v57 = vpop.f32.mrb[12].mxu0  ;;  %v856_v58 = vpop.f32.mrb[12].mxu1 }
 0x134   : > { %1550 = vst [vmem:[%s2177_s30 + $0x120] sm:$0xff] %v1486_v54  ;;  %v1193_v59 = vmul.f32 %v2162_v49, %v696_v57  ;;  %v1225_v60 = vmul.f32 %v2162_v49, %v856_v58  ;;  %v698_v61 = vpop.f32.mrb[13].mxu0  ;;  %v858_v62 = vpop.f32.mrb[13].mxu1  ;;  %vm1327_vm10 = vcmp.ge.f32.partialorder %v1263_v55, 0.0  ;;  %v1391_v63 = vmul.f32 0.2, %v1263_v55 }
 0x135   : > { %vm1359_vm11 = vcmp.ge.f32.partialorder %v1295_v56, 0.0  ;;  %v1423_v0 = vmul.f32 0.2, %v1295_v56 }
 0x136   : > { %v1264_v1 = vadd.f32 %v2167_v51, %v1193_v59  ;;  %v1296_v2 = vadd.f32 %v2167_v51, %v1225_v60  ;;  %v1455_v3 = vsel %vm1327_vm10, %v1263_v55, %v1391_v63 }
 0x137   : > { %v1487_v4 = vsel %vm1359_vm11, %v1295_v56, %v1423_v0  ;;  %v701_v5 = vpop.f32.mrb[14].mxu0  ;;  %v861_v6 = vpop.f32.mrb[14].mxu1  ;;  %1519 = vst [vmem:[%s2177_s30 + $0x28] sm:$0xff] %v1455_v3 }
 0x138   : > { %1551 = vst [vmem:[%s2177_s30 + $0x128] sm:$0xff] %v1487_v4  ;;  %vm1328_vm12 = vcmp.ge.f32.partialorder %v1264_v1, 0.0  ;;  %v1392_v7 = vmul.f32 0.2, %v1264_v1  ;;  %vm1360_vm13 = vcmp.ge.f32.partialorder %v1296_v2, 0.0  ;;  %v1194_v9 = vmul.f32 %v2162_v49, %v701_v5  ;;  %v703_v11 = vpop.f32.mrb[15].mxu0 }
 0x139   : > { %v1424_v8 = vmul.f32 0.2, %v1296_v2  ;;  %v1226_v10 = vmul.f32 %v2162_v49, %v861_v6  ;;  %v863_v12 = vpop.f32.mrb[15].mxu1 }
 0x13a   : > { %v1456_v13 = vsel %vm1328_vm12, %v1264_v1, %v1392_v7  ;;  %v1265_v15 = vadd.f32 %v2167_v51, %v1194_v9 }
 0x13b   : > { %v1488_v14 = vsel %vm1360_vm13, %v1296_v2, %v1424_v8  ;;  %1520 = vst [vmem:[%s2177_s30 + $0x30] sm:$0xff] %v1456_v13  ;;  %v1297_v16 = vadd.f32 %v2167_v51, %v1226_v10  ;;  %v706_v17 = vpop.f32.mrb[16].mxu0  ;;  %v866_v18 = vpop.f32.mrb[16].mxu1 }
 0x13c   : > { %1552 = vst [vmem:[%s2177_s30 + $0x130] sm:$0xff] %v1488_v14  ;;  %v1195_v19 = vmul.f32 %v2162_v49, %v706_v17  ;;  %v1227_v20 = vmul.f32 %v2162_v49, %v866_v18  ;;  %v708_v21 = vpop.f32.mrb[17].mxu0  ;;  %v868_v22 = vpop.f32.mrb[17].mxu1  ;;  %vm1329_vm14 = vcmp.ge.f32.partialorder %v1265_v15, 0.0  ;;  %v1393_v23 = vmul.f32 0.2, %v1265_v15 }
 0x13d   : > { %vm1361_vm15 = vcmp.ge.f32.partialorder %v1297_v16, 0.0  ;;  %v1425_v24 = vmul.f32 0.2, %v1297_v16 }
 0x13e   : > { %v1266_v25 = vadd.f32 %v2167_v51, %v1195_v19  ;;  %v1298_v26 = vadd.f32 %v2167_v51, %v1227_v20  ;;  %v1457_v27 = vsel %vm1329_vm14, %v1265_v15, %v1393_v23 }
 0x13f   : > { %v1489_v28 = vsel %vm1361_vm15, %v1297_v16, %v1425_v24  ;;  %v711_v29 = vpop.f32.mrb[18].mxu0  ;;  %v871_v30 = vpop.f32.mrb[18].mxu1  ;;  %1521 = vst [vmem:[%s2177_s30 + $0x38] sm:$0xff] %v1457_v27 }
 0x140   : > { %1553 = vst [vmem:[%s2177_s30 + $0x138] sm:$0xff] %v1489_v28  ;;  %vm1330_vm0 = vcmp.ge.f32.partialorder %v1266_v25, 0.0  ;;  %v1394_v31 = vmul.f32 0.2, %v1266_v25  ;;  %vm1362_vm1 = vcmp.ge.f32.partialorder %v1298_v26, 0.0  ;;  %v1196_v33 = vmul.f32 %v2162_v49, %v711_v29  ;;  %v713_v35 = vpop.f32.mrb[19].mxu0 }
 0x141   : > { %v1426_v32 = vmul.f32 0.2, %v1298_v26  ;;  %v1228_v34 = vmul.f32 %v2162_v49, %v871_v30  ;;  %v873_v36 = vpop.f32.mrb[19].mxu1 }
 0x142   : > { %v1458_v37 = vsel %vm1330_vm0, %v1266_v25, %v1394_v31  ;;  %v1267_v39 = vadd.f32 %v2167_v51, %v1196_v33 }
 0x143   : > { %v1490_v38 = vsel %vm1362_vm1, %v1298_v26, %v1426_v32  ;;  %1522 = vst [vmem:[%s2177_s30 + $0x40] sm:$0xff] %v1458_v37  ;;  %v1299_v40 = vadd.f32 %v2167_v51, %v1228_v34  ;;  %v716_v41 = vpop.f32.mrb[20].mxu0  ;;  %v876_v42 = vpop.f32.mrb[20].mxu1 }
 0x144   : > { %1554 = vst [vmem:[%s2177_s30 + $0x140] sm:$0xff] %v1490_v38  ;;  %v1197_v43 = vmul.f32 %v2162_v49, %v716_v41  ;;  %v1229_v44 = vmul.f32 %v2162_v49, %v876_v42  ;;  %v718_v45 = vpop.f32.mrb[21].mxu0  ;;  %v878_v46 = vpop.f32.mrb[21].mxu1  ;;  %vm1331_vm2 = vcmp.ge.f32.partialorder %v1267_v39, 0.0  ;;  %v1395_v47 = vmul.f32 0.2, %v1267_v39 }
 0x145   : > { %vm1363_vm3 = vcmp.ge.f32.partialorder %v1299_v40, 0.0  ;;  %v1427_v48 = vmul.f32 0.2, %v1299_v40 }
 0x146   : > { %v1268_v50 = vadd.f32 %v2167_v51, %v1197_v43  ;;  %v1300_v52 = vadd.f32 %v2167_v51, %v1229_v44  ;;  %v1459_v53 = vsel %vm1331_vm2, %v1267_v39, %v1395_v47 }
 0x147   : > { %v1491_v54 = vsel %vm1363_vm3, %v1299_v40, %v1427_v48  ;;  %v721_v55 = vpop.f32.mrb[22].mxu0  ;;  %v881_v56 = vpop.f32.mrb[22].mxu1  ;;  %1523 = vst [vmem:[%s2177_s30 + $0x48] sm:$0xff] %v1459_v53 }
 0x148   : > { %1555 = vst [vmem:[%s2177_s30 + $0x148] sm:$0xff] %v1491_v54  ;;  %vm1332_vm4 = vcmp.ge.f32.partialorder %v1268_v50, 0.0  ;;  %v1396_v57 = vmul.f32 0.2, %v1268_v50  ;;  %vm1364_vm5 = vcmp.ge.f32.partialorder %v1300_v52, 0.0  ;;  %v1198_v59 = vmul.f32 %v2162_v49, %v721_v55  ;;  %v723_v61 = vpop.f32.mrb[23].mxu0 }
 0x149   : > { %v1428_v58 = vmul.f32 0.2, %v1300_v52  ;;  %v1230_v60 = vmul.f32 %v2162_v49, %v881_v56  ;;  %v883_v62 = vpop.f32.mrb[23].mxu1 }
 0x14a   : > { %v1460_v63 = vsel %vm1332_vm4, %v1268_v50, %v1396_v57  ;;  %v1269_v1 = vadd.f32 %v2167_v51, %v1198_v59 }
 0x14b   : > { %v1492_v0 = vsel %vm1364_vm5, %v1300_v52, %v1428_v58  ;;  %1524 = vst [vmem:[%s2177_s30 + $0x50] sm:$0xff] %v1460_v63  ;;  %v1301_v2 = vadd.f32 %v2167_v51, %v1230_v60  ;;  %v726_v3 = vpop.f32.mrb[24].mxu0  ;;  %v886_v4 = vpop.f32.mrb[24].mxu1 }
 0x14c   : > { %1556 = vst [vmem:[%s2177_s30 + $0x150] sm:$0xff] %v1492_v0  ;;  %v1199_v5 = vmul.f32 %v2162_v49, %v726_v3  ;;  %v1231_v6 = vmul.f32 %v2162_v49, %v886_v4  ;;  %v728_v7 = vpop.f32.mrb[25].mxu0  ;;  %v888_v8 = vpop.f32.mrb[25].mxu1  ;;  %vm1333_vm6 = vcmp.ge.f32.partialorder %v1269_v1, 0.0  ;;  %v1397_v9 = vmul.f32 0.2, %v1269_v1 }
 0x14d   : > { %vm1365_vm7 = vcmp.ge.f32.partialorder %v1301_v2, 0.0  ;;  %v1429_v10 = vmul.f32 0.2, %v1301_v2 }
 0x14e   : > { %v1270_v11 = vadd.f32 %v2167_v51, %v1199_v5  ;;  %v1302_v12 = vadd.f32 %v2167_v51, %v1231_v6  ;;  %v1461_v13 = vsel %vm1333_vm6, %v1269_v1, %v1397_v9 }
 0x14f   : > { %v1493_v14 = vsel %vm1365_vm7, %v1301_v2, %v1429_v10  ;;  %v731_v15 = vpop.f32.mrb[26].mxu0  ;;  %v891_v16 = vpop.f32.mrb[26].mxu1  ;;  %1525 = vst [vmem:[%s2177_s30 + $0x58] sm:$0xff] %v1461_v13 }
 0x150   : > { %1557 = vst [vmem:[%s2177_s30 + $0x158] sm:$0xff] %v1493_v14  ;;  %vm1334_vm8 = vcmp.ge.f32.partialorder %v1270_v11, 0.0  ;;  %v1398_v17 = vmul.f32 0.2, %v1270_v11  ;;  %vm1366_vm9 = vcmp.ge.f32.partialorder %v1302_v12, 0.0  ;;  %v1200_v19 = vmul.f32 %v2162_v49, %v731_v15  ;;  %v733_v21 = vpop.f32.mrb[27].mxu0 }
 0x151   : > { %v1430_v18 = vmul.f32 0.2, %v1302_v12  ;;  %v1232_v20 = vmul.f32 %v2162_v49, %v891_v16  ;;  %v893_v22 = vpop.f32.mrb[27].mxu1 }
 0x152   : > { %v1462_v23 = vsel %vm1334_vm8, %v1270_v11, %v1398_v17  ;;  %v1271_v25 = vadd.f32 %v2167_v51, %v1200_v19 }
 0x153   : > { %v1494_v24 = vsel %vm1366_vm9, %v1302_v12, %v1430_v18  ;;  %1526 = vst [vmem:[%s2177_s30 + $0x60] sm:$0xff] %v1462_v23  ;;  %v1303_v26 = vadd.f32 %v2167_v51, %v1232_v20  ;;  %v736_v27 = vpop.f32.mrb[28].mxu0  ;;  %v896_v28 = vpop.f32.mrb[28].mxu1 }
 0x154   : > { %1558 = vst [vmem:[%s2177_s30 + $0x160] sm:$0xff] %v1494_v24  ;;  %v1201_v29 = vmul.f32 %v2162_v49, %v736_v27  ;;  %v1233_v30 = vmul.f32 %v2162_v49, %v896_v28  ;;  %v738_v31 = vpop.f32.mrb[29].mxu0  ;;  %v898_v32 = vpop.f32.mrb[29].mxu1  ;;  %vm1335_vm10 = vcmp.ge.f32.partialorder %v1271_v25, 0.0  ;;  %v1399_v33 = vmul.f32 0.2, %v1271_v25 }
 0x155   : > { %vm1367_vm11 = vcmp.ge.f32.partialorder %v1303_v26, 0.0  ;;  %v1431_v34 = vmul.f32 0.2, %v1303_v26 }
 0x156   : > { %v1272_v35 = vadd.f32 %v2167_v51, %v1201_v29  ;;  %v1304_v36 = vadd.f32 %v2167_v51, %v1233_v30  ;;  %v1463_v37 = vsel %vm1335_vm10, %v1271_v25, %v1399_v33 }
 0x157   : > { %v1495_v38 = vsel %vm1367_vm11, %v1303_v26, %v1431_v34  ;;  %v741_v39 = vpop.f32.mrb[30].mxu0  ;;  %v901_v40 = vpop.f32.mrb[30].mxu1  ;;  %1527 = vst [vmem:[%s2177_s30 + $0x68] sm:$0xff] %v1463_v37 }
 0x158   : > { %1559 = vst [vmem:[%s2177_s30 + $0x168] sm:$0xff] %v1495_v38  ;;  %vm1336_vm12 = vcmp.ge.f32.partialorder %v1272_v35, 0.0  ;;  %v1400_v41 = vmul.f32 0.2, %v1272_v35  ;;  %vm1368_vm13 = vcmp.ge.f32.partialorder %v1304_v36, 0.0  ;;  %v1202_v43 = vmul.f32 %v2162_v49, %v741_v39  ;;  %v743_v45 = vpop.f32.mrb[31].mxu0 }
 0x159   : > { %v1432_v42 = vmul.f32 0.2, %v1304_v36  ;;  %v1234_v44 = vmul.f32 %v2162_v49, %v901_v40  ;;  %v903_v46 = vpop.f32.mrb[31].mxu1 }
 0x15a   : > { %v1464_v47 = vsel %vm1336_vm12, %v1272_v35, %v1400_v41  ;;  %v1273_v50 = vadd.f32 %v2167_v51, %v1202_v43 }
 0x15b   : > { %v1496_v48 = vsel %vm1368_vm13, %v1304_v36, %v1432_v42  ;;  %1528 = vst [vmem:[%s2177_s30 + $0x70] sm:$0xff] %v1464_v47  ;;  %v1305_v52 = vadd.f32 %v2167_v51, %v1234_v44  ;;  %v746_v53 = vpop.f32.mrb[32].mxu0  ;;  %v906_v54 = vpop.f32.mrb[32].mxu1 }
 0x15c   : > { %1560 = vst [vmem:[%s2177_s30 + $0x170] sm:$0xff] %v1496_v48  ;;  %v1203_v55 = vmul.f32 %v2162_v49, %v746_v53  ;;  %v1235_v56 = vmul.f32 %v2162_v49, %v906_v54  ;;  %v748_v57 = vpop.f32.mrb[33].mxu0  ;;  %v908_v58 = vpop.f32.mrb[33].mxu1  ;;  %vm1337_vm14 = vcmp.ge.f32.partialorder %v1273_v50, 0.0  ;;  %v1401_v59 = vmul.f32 0.2, %v1273_v50 }
 0x15d   : > { %vm1369_vm15 = vcmp.ge.f32.partialorder %v1305_v52, 0.0  ;;  %v1433_v60 = vmul.f32 0.2, %v1305_v52 }
 0x15e   : > { %v1274_v61 = vadd.f32 %v2167_v51, %v1203_v55  ;;  %v1306_v62 = vadd.f32 %v2167_v51, %v1235_v56  ;;  %v1465_v63 = vsel %vm1337_vm14, %v1273_v50, %v1401_v59 }
 0x15f   : > { %v1497_v0 = vsel %vm1369_vm15, %v1305_v52, %v1433_v60  ;;  %v751_v1 = vpop.f32.mrb[34].mxu0  ;;  %v911_v2 = vpop.f32.mrb[34].mxu1  ;;  %1529 = vst [vmem:[%s2177_s30 + $0x78] sm:$0xff] %v1465_v63 }
 0x160   : > { %1561 = vst [vmem:[%s2177_s30 + $0x178] sm:$0xff] %v1497_v0  ;;  %vm1338_vm0 = vcmp.ge.f32.partialorder %v1274_v61, 0.0  ;;  %v1402_v3 = vmul.f32 0.2, %v1274_v61  ;;  %vm1370_vm1 = vcmp.ge.f32.partialorder %v1306_v62, 0.0  ;;  %v1204_v5 = vmul.f32 %v2162_v49, %v751_v1  ;;  %v753_v7 = vpop.f32.mrb[35].mxu0 }
 0x161   : > { %v1434_v4 = vmul.f32 0.2, %v1306_v62  ;;  %v1236_v6 = vmul.f32 %v2162_v49, %v911_v2  ;;  %v913_v8 = vpop.f32.mrb[35].mxu1 }
 0x162   : > { %v1466_v9 = vsel %vm1338_vm0, %v1274_v61, %v1402_v3  ;;  %v1275_v11 = vadd.f32 %v2167_v51, %v1204_v5 }
 0x163   : > { %v1498_v10 = vsel %vm1370_vm1, %v1306_v62, %v1434_v4  ;;  %1530 = vst [vmem:[%s2177_s30 + $0x80] sm:$0xff] %v1466_v9  ;;  %v1307_v12 = vadd.f32 %v2167_v51, %v1236_v6  ;;  %v756_v13 = vpop.f32.mrb[36].mxu0  ;;  %v916_v14 = vpop.f32.mrb[36].mxu1 }
 0x164   : > { %1562 = vst [vmem:[%s2177_s30 + $0x180] sm:$0xff] %v1498_v10  ;;  %v1205_v15 = vmul.f32 %v2162_v49, %v756_v13  ;;  %v1237_v16 = vmul.f32 %v2162_v49, %v916_v14  ;;  %v758_v17 = vpop.f32.mrb[37].mxu0  ;;  %v918_v18 = vpop.f32.mrb[37].mxu1  ;;  %vm1339_vm2 = vcmp.ge.f32.partialorder %v1275_v11, 0.0  ;;  %v1403_v19 = vmul.f32 0.2, %v1275_v11 }
 0x165   : > { %vm1371_vm3 = vcmp.ge.f32.partialorder %v1307_v12, 0.0  ;;  %v1435_v20 = vmul.f32 0.2, %v1307_v12 }
 0x166   : > { %v1276_v21 = vadd.f32 %v2167_v51, %v1205_v15  ;;  %v1308_v22 = vadd.f32 %v2167_v51, %v1237_v16  ;;  %v1467_v23 = vsel %vm1339_vm2, %v1275_v11, %v1403_v19 }
 0x167   : > { %v1499_v24 = vsel %vm1371_vm3, %v1307_v12, %v1435_v20  ;;  %v761_v25 = vpop.f32.mrb[38].mxu0  ;;  %v921_v26 = vpop.f32.mrb[38].mxu1  ;;  %1531 = vst [vmem:[%s2177_s30 + $0x88] sm:$0xff] %v1467_v23 }
 0x168   : > { %1563 = vst [vmem:[%s2177_s30 + $0x188] sm:$0xff] %v1499_v24  ;;  %vm1340_vm4 = vcmp.ge.f32.partialorder %v1276_v21, 0.0  ;;  %v1404_v27 = vmul.f32 0.2, %v1276_v21  ;;  %vm1372_vm5 = vcmp.ge.f32.partialorder %v1308_v22, 0.0  ;;  %v1206_v29 = vmul.f32 %v2162_v49, %v761_v25  ;;  %v763_v31 = vpop.f32.mrb[39].mxu0 }
 0x169   : > { %v1436_v28 = vmul.f32 0.2, %v1308_v22  ;;  %v1238_v30 = vmul.f32 %v2162_v49, %v921_v26  ;;  %v923_v32 = vpop.f32.mrb[39].mxu1 }
 0x16a   : > { %v1468_v33 = vsel %vm1340_vm4, %v1276_v21, %v1404_v27  ;;  %v1277_v35 = vadd.f32 %v2167_v51, %v1206_v29 }
 0x16b   : > { %v1500_v34 = vsel %vm1372_vm5, %v1308_v22, %v1436_v28  ;;  %1532 = vst [vmem:[%s2177_s30 + $0x90] sm:$0xff] %v1468_v33  ;;  %v1309_v36 = vadd.f32 %v2167_v51, %v1238_v30  ;;  %v766_v37 = vpop.f32.mrb[40].mxu0  ;;  %v926_v38 = vpop.f32.mrb[40].mxu1 }
 0x16c   : > { %1564 = vst [vmem:[%s2177_s30 + $0x190] sm:$0xff] %v1500_v34  ;;  %v1207_v39 = vmul.f32 %v2162_v49, %v766_v37  ;;  %v1239_v40 = vmul.f32 %v2162_v49, %v926_v38  ;;  %v768_v41 = vpop.f32.mrb[41].mxu0  ;;  %v928_v42 = vpop.f32.mrb[41].mxu1  ;;  %vm1341_vm6 = vcmp.ge.f32.partialorder %v1277_v35, 0.0  ;;  %v1405_v43 = vmul.f32 0.2, %v1277_v35 }
 0x16d   : > { %vm1373_vm7 = vcmp.ge.f32.partialorder %v1309_v36, 0.0  ;;  %v1437_v44 = vmul.f32 0.2, %v1309_v36 }
 0x16e   : > { %v1278_v45 = vadd.f32 %v2167_v51, %v1207_v39  ;;  %v1310_v46 = vadd.f32 %v2167_v51, %v1239_v40  ;;  %v1469_v47 = vsel %vm1341_vm6, %v1277_v35, %v1405_v43 }
 0x16f   : > { %v1501_v48 = vsel %vm1373_vm7, %v1309_v36, %v1437_v44  ;;  %v771_v50 = vpop.f32.mrb[42].mxu0  ;;  %v931_v52 = vpop.f32.mrb[42].mxu1  ;;  %1533 = vst [vmem:[%s2177_s30 + $0x98] sm:$0xff] %v1469_v47 }
 0x170   : > { %1565 = vst [vmem:[%s2177_s30 + $0x198] sm:$0xff] %v1501_v48  ;;  %vm1342_vm8 = vcmp.ge.f32.partialorder %v1278_v45, 0.0  ;;  %v1406_v53 = vmul.f32 0.2, %v1278_v45  ;;  %vm1374_vm9 = vcmp.ge.f32.partialorder %v1310_v46, 0.0  ;;  %v1208_v55 = vmul.f32 %v2162_v49, %v771_v50  ;;  %v773_v57 = vpop.f32.mrb[43].mxu0 }
 0x171   : > { %v1438_v54 = vmul.f32 0.2, %v1310_v46  ;;  %v1240_v56 = vmul.f32 %v2162_v49, %v931_v52  ;;  %v933_v58 = vpop.f32.mrb[43].mxu1 }
 0x172   : > { %v1470_v59 = vsel %vm1342_vm8, %v1278_v45, %v1406_v53  ;;  %v1279_v61 = vadd.f32 %v2167_v51, %v1208_v55 }
 0x173   : > { %v1502_v60 = vsel %vm1374_vm9, %v1310_v46, %v1438_v54  ;;  %1534 = vst [vmem:[%s2177_s30 + $0xa0] sm:$0xff] %v1470_v59  ;;  %v1311_v62 = vadd.f32 %v2167_v51, %v1240_v56  ;;  %v776_v63 = vpop.f32.mrb[44].mxu0  ;;  %v936_v0 = vpop.f32.mrb[44].mxu1 }
 0x174   : > { %1566 = vst [vmem:[%s2177_s30 + $0x1a0] sm:$0xff] %v1502_v60  ;;  %v1209_v1 = vmul.f32 %v2162_v49, %v776_v63  ;;  %v1241_v2 = vmul.f32 %v2162_v49, %v936_v0  ;;  %v778_v3 = vpop.f32.mrb[45].mxu0  ;;  %v938_v4 = vpop.f32.mrb[45].mxu1  ;;  %vm1343_vm10 = vcmp.ge.f32.partialorder %v1279_v61, 0.0  ;;  %v1407_v5 = vmul.f32 0.2, %v1279_v61 }
 0x175   : > { %vm1375_vm11 = vcmp.ge.f32.partialorder %v1311_v62, 0.0  ;;  %v1439_v6 = vmul.f32 0.2, %v1311_v62 }
 0x176   : > { %v1280_v7 = vadd.f32 %v2167_v51, %v1209_v1  ;;  %v1312_v8 = vadd.f32 %v2167_v51, %v1241_v2  ;;  %v1471_v9 = vsel %vm1343_vm10, %v1279_v61, %v1407_v5 }
 0x177   : > { %v1503_v10 = vsel %vm1375_vm11, %v1311_v62, %v1439_v6  ;;  %v781_v11 = vpop.f32.mrb[46].mxu0  ;;  %v941_v12 = vpop.f32.mrb[46].mxu1  ;;  %1535 = vst [vmem:[%s2177_s30 + $0xa8] sm:$0xff] %v1471_v9 }
 0x178   : > { %1567 = vst [vmem:[%s2177_s30 + $0x1a8] sm:$0xff] %v1503_v10  ;;  %vm1344_vm12 = vcmp.ge.f32.partialorder %v1280_v7, 0.0  ;;  %v1408_v13 = vmul.f32 0.2, %v1280_v7  ;;  %vm1376_vm13 = vcmp.ge.f32.partialorder %v1312_v8, 0.0  ;;  %v1210_v15 = vmul.f32 %v2162_v49, %v781_v11  ;;  %v783_v17 = vpop.f32.mrb[47].mxu0 }
 0x179   : > { %v1440_v14 = vmul.f32 0.2, %v1312_v8  ;;  %v1242_v16 = vmul.f32 %v2162_v49, %v941_v12  ;;  %v943_v18 = vpop.f32.mrb[47].mxu1 }
 0x17a   : > { %v1472_v19 = vsel %vm1344_vm12, %v1280_v7, %v1408_v13  ;;  %v1281_v21 = vadd.f32 %v2167_v51, %v1210_v15 }
 0x17b   : > { %v1504_v20 = vsel %vm1376_vm13, %v1312_v8, %v1440_v14  ;;  %1536 = vst [vmem:[%s2177_s30 + $0xb0] sm:$0xff] %v1472_v19  ;;  %v1313_v22 = vadd.f32 %v2167_v51, %v1242_v16  ;;  %v786_v23 = vpop.f32.mrb[48].mxu0  ;;  %v946_v24 = vpop.f32.mrb[48].mxu1 }
 0x17c   : > { %1568 = vst [vmem:[%s2177_s30 + $0x1b0] sm:$0xff] %v1504_v20  ;;  %v1211_v25 = vmul.f32 %v2162_v49, %v786_v23  ;;  %v1243_v26 = vmul.f32 %v2162_v49, %v946_v24  ;;  %v788_v27 = vpop.f32.mrb[49].mxu0  ;;  %v948_v28 = vpop.f32.mrb[49].mxu1  ;;  %vm1345_vm14 = vcmp.ge.f32.partialorder %v1281_v21, 0.0  ;;  %v1409_v29 = vmul.f32 0.2, %v1281_v21 }
 0x17d   : > { %vm1377_vm15 = vcmp.ge.f32.partialorder %v1313_v22, 0.0  ;;  %v1441_v30 = vmul.f32 0.2, %v1313_v22 }
 0x17e   : > { %v1282_v31 = vadd.f32 %v2167_v51, %v1211_v25  ;;  %v1314_v32 = vadd.f32 %v2167_v51, %v1243_v26  ;;  %v1473_v33 = vsel %vm1345_vm14, %v1281_v21, %v1409_v29 }
 0x17f   : > { %v1505_v34 = vsel %vm1377_vm15, %v1313_v22, %v1441_v30  ;;  %v791_v35 = vpop.f32.mrb[50].mxu0  ;;  %v951_v36 = vpop.f32.mrb[50].mxu1  ;;  %1537 = vst [vmem:[%s2177_s30 + $0xb8] sm:$0xff] %v1473_v33 }
 0x180   : > { %1569 = vst [vmem:[%s2177_s30 + $0x1b8] sm:$0xff] %v1505_v34  ;;  %vm1346_vm0 = vcmp.ge.f32.partialorder %v1282_v31, 0.0  ;;  %v1410_v37 = vmul.f32 0.2, %v1282_v31  ;;  %vm1378_vm1 = vcmp.ge.f32.partialorder %v1314_v32, 0.0  ;;  %v1212_v39 = vmul.f32 %v2162_v49, %v791_v35  ;;  %v793_v41 = vpop.f32.mrb[51].mxu0 }
 0x181   : > { %v1442_v38 = vmul.f32 0.2, %v1314_v32  ;;  %v1244_v40 = vmul.f32 %v2162_v49, %v951_v36  ;;  %v953_v42 = vpop.f32.mrb[51].mxu1 }
 0x182   : > { %v1474_v43 = vsel %vm1346_vm0, %v1282_v31, %v1410_v37  ;;  %v1283_v45 = vadd.f32 %v2167_v51, %v1212_v39 }
 0x183   : > { %v1506_v44 = vsel %vm1378_vm1, %v1314_v32, %v1442_v38  ;;  %1538 = vst [vmem:[%s2177_s30 + $0xc0] sm:$0xff] %v1474_v43  ;;  %v1315_v46 = vadd.f32 %v2167_v51, %v1244_v40  ;;  %v796_v47 = vpop.f32.mrb[52].mxu0  ;;  %v956_v48 = vpop.f32.mrb[52].mxu1 }
 0x184   : > { %1570 = vst [vmem:[%s2177_s30 + $0x1c0] sm:$0xff] %v1506_v44  ;;  %v1213_v50 = vmul.f32 %v2162_v49, %v796_v47  ;;  %v1245_v52 = vmul.f32 %v2162_v49, %v956_v48  ;;  %v798_v53 = vpop.f32.mrb[53].mxu0  ;;  %v958_v54 = vpop.f32.mrb[53].mxu1  ;;  %vm1347_vm2 = vcmp.ge.f32.partialorder %v1283_v45, 0.0  ;;  %v1411_v55 = vmul.f32 0.2, %v1283_v45 }
 0x185   : > { %vm1379_vm3 = vcmp.ge.f32.partialorder %v1315_v46, 0.0  ;;  %v1443_v56 = vmul.f32 0.2, %v1315_v46 }
 0x186   : > { %v1284_v57 = vadd.f32 %v2167_v51, %v1213_v50  ;;  %v1316_v58 = vadd.f32 %v2167_v51, %v1245_v52  ;;  %v1475_v59 = vsel %vm1347_vm2, %v1283_v45, %v1411_v55 }
 0x187   : > { %v1507_v60 = vsel %vm1379_vm3, %v1315_v46, %v1443_v56  ;;  %v801_v61 = vpop.f32.mrb[54].mxu0  ;;  %v961_v62 = vpop.f32.mrb[54].mxu1  ;;  %1539 = vst [vmem:[%s2177_s30 + $0xc8] sm:$0xff] %v1475_v59 }
 0x188   : > { %1571 = vst [vmem:[%s2177_s30 + $0x1c8] sm:$0xff] %v1507_v60  ;;  %vm1348_vm4 = vcmp.ge.f32.partialorder %v1284_v57, 0.0  ;;  %v1412_v63 = vmul.f32 0.2, %v1284_v57  ;;  %vm1380_vm5 = vcmp.ge.f32.partialorder %v1316_v58, 0.0  ;;  %v1214_v1 = vmul.f32 %v2162_v49, %v801_v61  ;;  %v803_v3 = vpop.f32.mrb[55].mxu0 }
 0x189   : > { %v1444_v0 = vmul.f32 0.2, %v1316_v58  ;;  %v1246_v2 = vmul.f32 %v2162_v49, %v961_v62  ;;  %v963_v4 = vpop.f32.mrb[55].mxu1 }
 0x18a   : > { %v1476_v5 = vsel %vm1348_vm4, %v1284_v57, %v1412_v63  ;;  %v1285_v7 = vadd.f32 %v2167_v51, %v1214_v1 }
 0x18b   : > { %v1508_v6 = vsel %vm1380_vm5, %v1316_v58, %v1444_v0  ;;  %1540 = vst [vmem:[%s2177_s30 + $0xd0] sm:$0xff] %v1476_v5  ;;  %v1317_v8 = vadd.f32 %v2167_v51, %v1246_v2  ;;  %v806_v9 = vpop.f32.mrb[56].mxu0  ;;  %v966_v10 = vpop.f32.mrb[56].mxu1 }
 0x18c   : > { %1572 = vst [vmem:[%s2177_s30 + $0x1d0] sm:$0xff] %v1508_v6  ;;  %v1215_v11 = vmul.f32 %v2162_v49, %v806_v9  ;;  %v1247_v12 = vmul.f32 %v2162_v49, %v966_v10  ;;  %v808_v13 = vpop.f32.mrb[57].mxu0  ;;  %v968_v14 = vpop.f32.mrb[57].mxu1  ;;  %vm1349_vm6 = vcmp.ge.f32.partialorder %v1285_v7, 0.0  ;;  %v1413_v15 = vmul.f32 0.2, %v1285_v7 }
 0x18d   : > { %vm1381_vm7 = vcmp.ge.f32.partialorder %v1317_v8, 0.0  ;;  %v1445_v16 = vmul.f32 0.2, %v1317_v8 }
 0x18e   : > { %v1286_v17 = vadd.f32 %v2167_v51, %v1215_v11  ;;  %v1318_v18 = vadd.f32 %v2167_v51, %v1247_v12  ;;  %v1477_v19 = vsel %vm1349_vm6, %v1285_v7, %v1413_v15 }
 0x18f   : > { %v1509_v20 = vsel %vm1381_vm7, %v1317_v8, %v1445_v16  ;;  %v811_v21 = vpop.f32.mrb[58].mxu0  ;;  %v971_v22 = vpop.f32.mrb[58].mxu1  ;;  %1541 = vst [vmem:[%s2177_s30 + $0xd8] sm:$0xff] %v1477_v19 }
 0x190   : > { %1573 = vst [vmem:[%s2177_s30 + $0x1d8] sm:$0xff] %v1509_v20  ;;  %vm1350_vm8 = vcmp.ge.f32.partialorder %v1286_v17, 0.0  ;;  %v1414_v23 = vmul.f32 0.2, %v1286_v17  ;;  %vm1382_vm9 = vcmp.ge.f32.partialorder %v1318_v18, 0.0  ;;  %v1216_v25 = vmul.f32 %v2162_v49, %v811_v21  ;;  %v813_v27 = vpop.f32.mrb[59].mxu0 }
 0x191   : > { %v1446_v24 = vmul.f32 0.2, %v1318_v18  ;;  %v1248_v26 = vmul.f32 %v2162_v49, %v971_v22  ;;  %v973_v28 = vpop.f32.mrb[59].mxu1 }
 0x192   : > { %v1478_v29 = vsel %vm1350_vm8, %v1286_v17, %v1414_v23  ;;  %v1287_v31 = vadd.f32 %v2167_v51, %v1216_v25 }
 0x193   : > { %v1510_v30 = vsel %vm1382_vm9, %v1318_v18, %v1446_v24  ;;  %1542 = vst [vmem:[%s2177_s30 + $0xe0] sm:$0xff] %v1478_v29  ;;  %v1319_v32 = vadd.f32 %v2167_v51, %v1248_v26  ;;  %v816_v33 = vpop.f32.mrb[60].mxu0  ;;  %v976_v34 = vpop.f32.mrb[60].mxu1 }
 0x194   : > { %1574 = vst [vmem:[%s2177_s30 + $0x1e0] sm:$0xff] %v1510_v30  ;;  %v1217_v35 = vmul.f32 %v2162_v49, %v816_v33  ;;  %v1249_v36 = vmul.f32 %v2162_v49, %v976_v34  ;;  %v818_v37 = vpop.f32.mrb[61].mxu0  ;;  %v978_v38 = vpop.f32.mrb[61].mxu1  ;;  %vm1351_vm10 = vcmp.ge.f32.partialorder %v1287_v31, 0.0  ;;  %v1415_v39 = vmul.f32 0.2, %v1287_v31 }
 0x195   : > { %vm1383_vm11 = vcmp.ge.f32.partialorder %v1319_v32, 0.0  ;;  %v1447_v40 = vmul.f32 0.2, %v1319_v32 }
 0x196   : > { %v1288_v41 = vadd.f32 %v2167_v51, %v1217_v35  ;;  %v1320_v42 = vadd.f32 %v2167_v51, %v1249_v36  ;;  %v1479_v43 = vsel %vm1351_vm10, %v1287_v31, %v1415_v39 }
 0x197   : > { %v1511_v44 = vsel %vm1383_vm11, %v1319_v32, %v1447_v40  ;;  %v821_v45 = vpop.f32.mrb[62].mxu0  ;;  %v981_v46 = vpop.f32.mrb[62].mxu1  ;;  %1543 = vst [vmem:[%s2177_s30 + $0xe8] sm:$0xff] %v1479_v43 }
 0x198   : > { %1575 = vst [vmem:[%s2177_s30 + $0x1e8] sm:$0xff] %v1511_v44  ;;  %vm1352_vm12 = vcmp.ge.f32.partialorder %v1288_v41, 0.0  ;;  %v1416_v47 = vmul.f32 0.2, %v1288_v41  ;;  %vm1384_vm13 = vcmp.ge.f32.partialorder %v1320_v42, 0.0  ;;  %v1218_v50 = vmul.f32 %v2162_v49, %v821_v45  ;;  %v823_v53 = vpop.f32.mrb[63].mxu0 }
 0x199   : > { %v1448_v48 = vmul.f32 0.2, %v1320_v42  ;;  %v1250_v52 = vmul.f32 %v2162_v49, %v981_v46  ;;  %v983_v54 = vpop.f32.mrb[63].mxu1 }
 0x19a   : > { %v1480_v55 = vsel %vm1352_vm12, %v1288_v41, %v1416_v47  ;;  %v1289_v57 = vadd.f32 %v2167_v51, %v1218_v50 }
 0x19b   : > { %v1512_v56 = vsel %vm1384_vm13, %v1320_v42, %v1448_v48  ;;  %1544 = vst [vmem:[%s2177_s30 + $0xf0] sm:$0xff] %v1480_v55  ;;  %v1321_v58 = vadd.f32 %v2167_v51, %v1250_v52 }
 0x19c   : > { %1576 = vst [vmem:[%s2177_s30 + $0x1f0] sm:$0xff] %v1512_v56  ;;  %vm1353_vm14 = vcmp.ge.f32.partialorder %v1289_v57, 0.0  ;;  %v1417_v59 = vmul.f32 0.2, %v1289_v57 }
 0x19d   : > { %vm1385_vm15 = vcmp.ge.f32.partialorder %v1321_v58, 0.0  ;;  %v1449_v60 = vmul.f32 0.2, %v1321_v58 }
 0x19e   : > { %v1481_v61 = vsel %vm1353_vm14, %v1289_v57, %v1417_v59 }
 0x19f   : > { %v1513_v62 = vsel %vm1385_vm15, %v1321_v58, %v1449_v60  ;;  %1545 = vst [vmem:[%s2177_s30 + $0xf8] sm:$0xff] %v1481_v61 }
 0x1a0   : > { %1577 = vst [vmem:[%s2177_s30 + $0x1f8] sm:$0xff] %v1513_v62 }
 0x1a1 PF: > { %s14_s17 = sadd.s32 1, %s1849_s17   ;;  %s2381_s15 = smov %s1845_s16 }
 0x1a2   : > { %p11_p5 = scmp.ge.s32.totalorder %s14_s17, 6   ;;  %s2382_s16 = smov %s2384_s18 }
 0x1a4   :  { %13 = sbr.rel (!%p11_p5) target bundleno = 2 (0x2), region = 83 }

</bundles_post_ra>
